<compile_context>
chip_gen: v7x
topology: tpu7x:2x2x1
jax: 0.10.0
libtpu: 0.0.40
codegen_flags: <defaults>
</compile_context>

<pallas_src>
import functools
import numpy as np
import jax
import jax.numpy as jnp
from jax import lax
from jax.experimental import pallas as pl
from jax.experimental.pallas import tpu as pltpu

OMEGA = 30.0
LN_EPS = 1e-5


# --------------------------------------------------------------------------
# Kernel
# --------------------------------------------------------------------------
def fkan_inr_kernel(x_ref, p_ref, wc_ref, ws_ref, fb_ref,
                    w1_ref, b1_ref, w2_ref, b2_ref, w3_ref, b3_ref,
                    w4_ref, b4_ref, w5_ref, b5_ref,
                    o_ref, *, sub_tile):
    tn = x_ref.shape[1]
    n_sub = tn // sub_tile
    hidden = wc_ref.shape[0]
    inv_h = 1.0 / hidden

    def lin(w_ref, b_ref, a):
        return jnp.dot(w_ref[...], a,
                       preferred_element_type=jnp.float32) + b_ref[...]

    def act(y):
        # (y + tanh(omega*y)) * sigmoid(y); sigmoid via tanh -> 1 EUP push.
        return (y + jnp.tanh(OMEGA * y)) * (0.5 * (1.0 + jnp.tanh(0.5 * y)))

    def body(c, carry):
        start = pl.multiple_of(c * sub_tile, 128)
        x = x_ref[:, pl.ds(start, sub_tile)]              # (I, sub)

        # --- FourierKAN layer: phases via tiny MXU matmul ------------------
        ph = jnp.dot(p_ref[...], x,
                     preferred_element_type=jnp.float32)  # (I*G, sub)
        h = jnp.dot(wc_ref[...], jnp.cos(ph),
                    preferred_element_type=jnp.float32)
        h = h + jnp.dot(ws_ref[...], jnp.sin(ph),
                        preferred_element_type=jnp.float32)
        h = h + fb_ref[...]                               # (hidden, sub)

        # LayerNorm over features (sublanes); gamma/beta folded into w1/b1.
        mu = jnp.sum(h, axis=0, keepdims=True) * inv_h
        hc = h - mu
        var = jnp.sum(hc * hc, axis=0, keepdims=True) * inv_h
        h = hc * lax.rsqrt(var + LN_EPS)

        # --- LinearINR chain + final linear --------------------------------
        h = act(lin(w1_ref, b1_ref, h))
        h = act(lin(w2_ref, b2_ref, h))
        h = act(lin(w3_ref, b3_ref, h))
        h = act(lin(w4_ref, b4_ref, h))
        out = lin(w5_ref, b5_ref, h)                      # (out_dim, sub)

        o_ref[:, pl.ds(start, sub_tile)] = out.astype(o_ref.dtype)
        return carry

    lax.fori_loop(0, n_sub, body, 0, unroll=(n_sub <= 8))


# --------------------------------------------------------------------------
# Wrapper
# --------------------------------------------------------------------------
def _pick_tn(N, max_tn, prefer_even_grid=True):
    """Largest 128-multiple tile dividing N (<= max_tn); prefer an even grid."""
    max_tn = min(max_tn, N)
    best = None
    best_even = None
    t = 128
    while t <= max_tn:
        if N % t == 0:
            best = t
            steps = N // t
            if steps == 1 or steps % 2 == 0:
                best_even = t
        t += 128
    assert best is not None
    if prefer_even_grid and best_even is not None and 2 * best_even >= best:
        return best_even
    return best


def fourier_kan_inr(coords, kp, *, max_tn=4096, sub_tile=256,
                    prefer_even_grid=True):
    N, input_dim = coords.shape
    out_dim = kp["w5"].shape[0]
    # TODO(synk): arbitrary N (e.g. H*W grids) would need padding/masking.
    assert N % 128 == 0, "N must be a multiple of 128"

    tn = _pick_tn(N, max_tn, prefer_even_grid)
    sub = sub_tile if (sub_tile <= tn and tn % sub_tile == 0) else 128
    sub = min(sub, tn)

    # If the INR is evaluated repeatedly on the same grid, hoist this
    # transpose (and keep the consumer in (out_dim, N) layout).
    x_t = coords.T                                        # (input_dim, N)

    weight_names = ["p", "wc", "ws", "fb",
                    "w1", "b1", "w2", "b2", "w3", "b3", "w4", "b4", "w5", "b5"]
    weights = [kp[k] for k in weight_names]

    def full_spec(arr):
        shape = arr.shape
        return pl.BlockSpec(shape, lambda n, _s=shape: (0,) * len(_s))

    in_specs = [pl.BlockSpec((input_dim, tn), lambda n: (0, n))]
    in_specs += [full_spec(w) for w in weights]

    # Cost estimate (per point): matmul flops, cos/sin + 2 tanh per siren elem.
    IG, I = kp["p"].shape
    H = kp["wc"].shape[0]
    H2 = kp["w1"].shape[0]
    O4 = kp["w4"].shape[0]
    O = out_dim
    flops = N * (2 * IG * I + 2 * 2 * H * IG
                 + 2 * (H2 * H + H2 * H2 + H2 * H2 + O4 * H2 + O * O4))
    trans = N * (2 * IG + 2 * (H2 + H2 + H2 + O4))
    wbytes = sum(int(np.prod(w.shape)) for w in weights) * 4
    ce = pl.CostEstimate(flops=int(flops), transcendentals=int(trans),
                         bytes_accessed=int(4 * N * (I + O) + wbytes))

    kernel = functools.partial(fkan_inr_kernel, sub_tile=sub)

    out_t = pl.pallas_call(
        kernel,
        out_shape=jax.ShapeDtypeStruct((out_dim, N), jnp.float32),
        grid_spec=pltpu.PrefetchScalarGridSpec(
            num_scalar_prefetch=0,
            grid=(N // tn,),
            in_specs=in_specs,
            out_specs=pl.BlockSpec((out_dim, tn), lambda n: (0, n)),
        ),
        compiler_params=pltpu.CompilerParams(
            dimension_semantics=("parallel",)),
        cost_estimate=ce,
    )(x_t, *weights)

    # Module returns (output, coords); transpose back outside the kernel.
    return out_t.T, coords


# --------------------------------------------------------------------------
# Parameters (module-faithful) + kernel-layout preparation
# --------------------------------------------------------------------------
def init_params(key, input_dim, output_dim, hidden_dim, grid_size):
    ks = jax.random.split(key, 8)
    # FourierKANLayer (smooth_initialization=True, init_freq_scale=1.0)
    grid_norm = (jnp.arange(grid_size, dtype=jnp.float32) + 1.0) ** 2
    coef_norm = jnp.sqrt(jnp.float32(input_dim)) * grid_norm          # (G,)
    cos_amp = jax.random.normal(ks[0], (hidden_dim, input_dim, grid_size),
                                jnp.float32) / coef_norm
    sin_amp = jax.random.normal(ks[1], (hidden_dim, input_dim, grid_size),
                                jnp.float32) / coef_norm
    freqs = jnp.arange(1.0, grid_size + 1.0, dtype=jnp.float32)        # (G,)
    fbias = jnp.zeros((hidden_dim,), jnp.float32)
    gamma = jnp.ones((hidden_dim,), jnp.float32)
    beta = jnp.zeros((hidden_dim,), jnp.float32)

    def linear_inr(k, fan_in, fan_out):
        kw, kb = jax.random.split(k)
        wb = float(np.sqrt(6.0 / fan_in) / OMEGA)
        bb = float(1.0 / np.sqrt(fan_in))
        W = jax.random.uniform(kw, (fan_out, fan_in), jnp.float32, -wb, wb)
        b = jax.random.uniform(kb, (fan_out,), jnp.float32, -bb, bb)
        return W, b

    def plain_linear(k, fan_in, fan_out):
        kw, kb = jax.random.split(k)
        bb = float(1.0 / np.sqrt(fan_in))
        W = jax.random.uniform(kw, (fan_out, fan_in), jnp.float32, -bb, bb)
        b = jax.random.uniform(kb, (fan_out,), jnp.float32, -bb, bb)
        return W, b

    h, h2, o4 = hidden_dim, 2 * hidden_dim, 4 * output_dim
    w1, b1 = linear_inr(ks[2], h, h2)
    w2, b2 = linear_inr(ks[3], h2, h2)
    w3, b3 = linear_inr(ks[4], h2, h2)
    w4, b4 = linear_inr(ks[5], h2, o4)
    w5, b5 = plain_linear(ks[6], o4, output_dim)

    return dict(cos_amp=cos_amp, sin_amp=sin_amp, freqs=freqs, fbias=fbias,
                gamma=gamma, beta=beta,
                w1=w1, b1=b1, w2=w2, b2=b2, w3=w3, b3=b3, w4=w4, b4=b4,
                w5=w5, b5=b5)


def prepare_kernel_params(params, *, input_dim, grid_size):
    """Repack module params into kernel-friendly (fan_out, fan_in) slabs."""
    hidden = params["cos_amp"].shape[0]
    freqs = params["freqs"].astype(jnp.float32)

    # P[i*G + g, i] = freqs[g]  -> ph = P @ x gives phases stacked per input.
    P = jnp.kron(jnp.eye(input_dim, dtype=jnp.float32),
                 freqs.reshape(grid_size, 1))             # (I*G, I)
    wc = params["cos_amp"].reshape(hidden, input_dim * grid_size)
    ws = params["sin_amp"].reshape(hidden, input_dim * grid_size)
    fb = params["fbias"].reshape(hidden, 1)

    # Fold LayerNorm affine (gamma, beta) into the first siren linear.
    gamma = params["gamma"]
    beta = params["beta"]
    w1 = params["w1"] * gamma[None, :]
    b1 = params["b1"] + params["w1"] @ beta

    def col(b):
        return b.reshape(-1, 1)

    return dict(p=P, wc=wc, ws=ws, fb=fb,
                w1=w1, b1=col(b1),
                w2=params["w2"], b2=col(params["b2"]),
                w3=params["w3"], b3=col(params["b3"]),
                w4=params["w4"], b4=col(params["b4"]),
                w5=params["w5"], b5=col(params["b5"]))


# --------------------------------------------------------------------------
# Pure-JAX reference (mirrors the PyTorch module semantics)
# --------------------------------------------------------------------------
def reference_forward(coords, params, *, input_dim, grid_size):
    x = coords.reshape(-1, input_dim)
    freqs = params["freqs"]
    phases = x[:, None, :, None] * freqs[None, None, None, :]   # (N,1,I,G)
    h = jnp.sum(jnp.cos(phases) * params["cos_amp"][None], axis=(-2, -1))
    h = h + jnp.sum(jnp.sin(phases) * params["sin_amp"][None], axis=(-2, -1))
    h = h + params["fbias"][None, :]
    mu = h.mean(-1, keepdims=True)
    var = ((h - mu) ** 2).mean(-1, keepdims=True)
    h = (h - mu) / jnp.sqrt(var + LN_EPS) * params["gamma"] + params["beta"]
    for wn, bn in [("w1", "b1"), ("w2", "b2"), ("w3", "b3"), ("w4", "b4")]:
        y = h @ params[wn].T + params[bn]
        h = (y + jnp.tanh(OMEGA * y)) * jax.nn.sigmoid(y)
    out = h @ params["w5"].T + params["b5"]
    return out, coords


# --------------------------------------------------------------------------
if __name__ == "__main__":
    input_dim, output_dim, hidden_dim, grid_size = 2, 3, 32, 8
    N = 256

    key = jax.random.PRNGKey(0)
    kparam_key, kx = jax.random.split(key)
    params = init_params(kparam_key, input_dim, output_dim, hidden_dim,
                         grid_size)
    kparams = prepare_kernel_params(params, input_dim=input_dim,
                                    grid_size=grid_size)
    coords = jax.random.uniform(kx, (N, input_dim), jnp.float32, -1.0, 1.0)

    out, coords_out = fourier_kan_inr(coords, kparams)
    out = jax.block_until_ready(out)

    ref_out, _ = reference_forward(coords, params, input_dim=input_dim,
                                   grid_size=grid_size)
    np.testing.assert_allclose(np.asarray(out), np.asarray(ref_out),
                               rtol=1e-3, atol=1e-3)
    print("KERNEL_OK")
</pallas_src>

<mosaic_0001>
module attributes {stable_mosaic.version = 11 : i64} {
  func.func @fkan_inr_kernel(%arg0: i32, %arg1: memref<2x256xf32, #tpu.memory_space<vmem>>, %arg2: memref<16x2xf32, #tpu.memory_space<vmem>>, %arg3: memref<32x16xf32, #tpu.memory_space<vmem>>, %arg4: memref<32x16xf32, #tpu.memory_space<vmem>>, %arg5: memref<32x1xf32, #tpu.memory_space<vmem>>, %arg6: memref<64x32xf32, #tpu.memory_space<vmem>>, %arg7: memref<64x1xf32, #tpu.memory_space<vmem>>, %arg8: memref<64x64xf32, #tpu.memory_space<vmem>>, %arg9: memref<64x1xf32, #tpu.memory_space<vmem>>, %arg10: memref<64x64xf32, #tpu.memory_space<vmem>>, %arg11: memref<64x1xf32, #tpu.memory_space<vmem>>, %arg12: memref<12x64xf32, #tpu.memory_space<vmem>>, %arg13: memref<12x1xf32, #tpu.memory_space<vmem>>, %arg14: memref<3x12xf32, #tpu.memory_space<vmem>>, %arg15: memref<3x1xf32, #tpu.memory_space<vmem>>, %arg16: memref<3x256xf32, #tpu.memory_space<vmem>>) attributes {dimension_semantics = [#tpu.dimension_semantics<parallel>], iteration_bounds = array<i64: 1>, scalar_prefetch = 0 : i64, scratch_operands = 0 : i64, tpu.core_type = #tpu.core_type<tc>, window_params = [{transform_indices = @transform_0, window_bounds = array<i64: 2, 256>}, {pipeline_mode = #tpu.pipeline_mode<synchronous>, transform_indices = @transform_1, window_bounds = array<i64: 16, 2>}, {pipeline_mode = #tpu.pipeline_mode<synchronous>, transform_indices = @transform_2, window_bounds = array<i64: 32, 16>}, {pipeline_mode = #tpu.pipeline_mode<synchronous>, transform_indices = @transform_3, window_bounds = array<i64: 32, 16>}, {pipeline_mode = #tpu.pipeline_mode<synchronous>, transform_indices = @transform_4, window_bounds = array<i64: 32, 1>}, {pipeline_mode = #tpu.pipeline_mode<synchronous>, transform_indices = @transform_5, window_bounds = array<i64: 64, 32>}, {pipeline_mode = #tpu.pipeline_mode<synchronous>, transform_indices = @transform_6, window_bounds = array<i64: 64, 1>}, {pipeline_mode = #tpu.pipeline_mode<synchronous>, transform_indices = @transform_7, window_bounds = array<i64: 64, 64>}, {pipeline_mode = #tpu.pipeline_mode<synchronous>, transform_indices = @transform_8, window_bounds = array<i64: 64, 1>}, {pipeline_mode = #tpu.pipeline_mode<synchronous>, transform_indices = @transform_9, window_bounds = array<i64: 64, 64>}, {pipeline_mode = #tpu.pipeline_mode<synchronous>, transform_indices = @transform_10, window_bounds = array<i64: 64, 1>}, {pipeline_mode = #tpu.pipeline_mode<synchronous>, transform_indices = @transform_11, window_bounds = array<i64: 12, 64>}, {pipeline_mode = #tpu.pipeline_mode<synchronous>, transform_indices = @transform_12, window_bounds = array<i64: 12, 1>}, {pipeline_mode = #tpu.pipeline_mode<synchronous>, transform_indices = @transform_13, window_bounds = array<i64: 3, 12>}, {pipeline_mode = #tpu.pipeline_mode<synchronous>, transform_indices = @transform_14, window_bounds = array<i64: 3, 1>}, {transform_indices = @transform_15, window_bounds = array<i64: 3, 256>}]} {
    %c0_i32 = arith.constant 0 : i32
    %c256_i32 = arith.constant 256 : i32
    %0 = arith.muli %c0_i32, %c256_i32 : i32
    %1 = tpu.assume_multiple %0, 128 : i32
    %c0 = arith.constant 0 : index
    %2 = arith.index_cast %1 : i32 to index
    %3 = vector.load %arg1[%c0, %2] : memref<2x256xf32, #tpu.memory_space<vmem>>, vector<2x256xf32>
    %c0_0 = arith.constant 0 : index
    %c0_1 = arith.constant 0 : index
    %4 = vector.load %arg2[%c0_0, %c0_1] : memref<16x2xf32, #tpu.memory_space<vmem>>, vector<16x2xf32>
    %cst = arith.constant dense<0.000000e+00> : vector<16x256xf32>
    %5 = tpu.matmul %4, %3, %cst {dimension_numbers = #tpu.dot_dimension_numbers<[1], [0], [0], [1], [0, 0, 1, 1], [], []>} : vector<16x2xf32>, vector<2x256xf32>, vector<16x256xf32> -> vector<16x256xf32>
    %c0_2 = arith.constant 0 : index
    %c0_3 = arith.constant 0 : index
    %6 = vector.load %arg3[%c0_2, %c0_3] : memref<32x16xf32, #tpu.memory_space<vmem>>, vector<32x16xf32>
    %7 = math.cos %5 : vector<16x256xf32>
    %cst_4 = arith.constant dense<0.000000e+00> : vector<32x256xf32>
    %8 = tpu.matmul %6, %7, %cst_4 {dimension_numbers = #tpu.dot_dimension_numbers<[1], [0], [0], [1], [0, 0, 1, 1], [], []>} : vector<32x16xf32>, vector<16x256xf32>, vector<32x256xf32> -> vector<32x256xf32>
    %c0_5 = arith.constant 0 : index
    %c0_6 = arith.constant 0 : index
    %9 = vector.load %arg4[%c0_5, %c0_6] : memref<32x16xf32, #tpu.memory_space<vmem>>, vector<32x16xf32>
    %10 = math.sin %5 : vector<16x256xf32>
    %cst_7 = arith.constant dense<0.000000e+00> : vector<32x256xf32>
    %11 = tpu.matmul %9, %10, %cst_7 {dimension_numbers = #tpu.dot_dimension_numbers<[1], [0], [0], [1], [0, 0, 1, 1], [], []>} : vector<32x16xf32>, vector<16x256xf32>, vector<32x256xf32> -> vector<32x256xf32>
    %12 = arith.addf %8, %11 : vector<32x256xf32>
    %c0_8 = arith.constant 0 : index
    %c0_9 = arith.constant 0 : index
    %13 = vector.load %arg5[%c0_8, %c0_9] : memref<32x1xf32, #tpu.memory_space<vmem>>, vector<32x1xf32>
    %14 = vector.broadcast %13 : vector<32x1xf32> to vector<32x256xf32>
    %15 = arith.addf %12, %14 : vector<32x256xf32>
    %cst_10 = arith.constant dense<0.000000e+00> : vector<256xf32>
    %16 = vector.multi_reduction <add>, %15, %cst_10 [0] : vector<32x256xf32> to vector<256xf32>
    %17 = vector.shape_cast %16 : vector<256xf32> to vector<1x256xf32>
    %cst_11 = arith.constant 3.125000e-02 : f32
    %18 = vector.broadcast %cst_11 : f32 to vector<1x256xf32>
    %19 = arith.mulf %17, %18 : vector<1x256xf32>
    %20 = vector.broadcast %19 : vector<1x256xf32> to vector<32x256xf32>
    %21 = arith.subf %15, %20 : vector<32x256xf32>
    %22 = arith.mulf %21, %21 : vector<32x256xf32>
    %cst_12 = arith.constant dense<0.000000e+00> : vector<256xf32>
    %23 = vector.multi_reduction <add>, %22, %cst_12 [0] : vector<32x256xf32> to vector<256xf32>
    %24 = vector.shape_cast %23 : vector<256xf32> to vector<1x256xf32>
    %cst_13 = arith.constant 3.125000e-02 : f32
    %25 = vector.broadcast %cst_13 : f32 to vector<1x256xf32>
    %26 = arith.mulf %24, %25 : vector<1x256xf32>
    %cst_14 = arith.constant 9.99999974E-6 : f32
    %27 = vector.broadcast %cst_14 : f32 to vector<1x256xf32>
    %28 = arith.addf %26, %27 : vector<1x256xf32>
    %29 = math.rsqrt %28 : vector<1x256xf32>
    %30 = vector.broadcast %29 : vector<1x256xf32> to vector<32x256xf32>
    %31 = arith.mulf %21, %30 : vector<32x256xf32>
    %c0_15 = arith.constant 0 : index
    %c0_16 = arith.constant 0 : index
    %32 = vector.load %arg6[%c0_15, %c0_16] : memref<64x32xf32, #tpu.memory_space<vmem>>, vector<64x32xf32>
    %cst_17 = arith.constant dense<0.000000e+00> : vector<64x256xf32>
    %33 = tpu.matmul %32, %31, %cst_17 {dimension_numbers = #tpu.dot_dimension_numbers<[1], [0], [0], [1], [0, 0, 1, 1], [], []>} : vector<64x32xf32>, vector<32x256xf32>, vector<64x256xf32> -> vector<64x256xf32>
    %c0_18 = arith.constant 0 : index
    %c0_19 = arith.constant 0 : index
    %34 = vector.load %arg7[%c0_18, %c0_19] : memref<64x1xf32, #tpu.memory_space<vmem>>, vector<64x1xf32>
    %35 = vector.broadcast %34 : vector<64x1xf32> to vector<64x256xf32>
    %36 = arith.addf %33, %35 : vector<64x256xf32>
    %cst_20 = arith.constant 3.000000e+01 : f32
    %37 = vector.broadcast %cst_20 : f32 to vector<64x256xf32>
    %38 = arith.mulf %37, %36 : vector<64x256xf32>
    %39 = math.tanh %38 : vector<64x256xf32>
    %40 = arith.addf %36, %39 : vector<64x256xf32>
    %cst_21 = arith.constant 5.000000e-01 : f32
    %41 = vector.broadcast %cst_21 : f32 to vector<64x256xf32>
    %42 = arith.mulf %41, %36 : vector<64x256xf32>
    %43 = math.tanh %42 : vector<64x256xf32>
    %cst_22 = arith.constant 1.000000e+00 : f32
    %44 = vector.broadcast %cst_22 : f32 to vector<64x256xf32>
    %45 = arith.addf %44, %43 : vector<64x256xf32>
    %cst_23 = arith.constant 5.000000e-01 : f32
    %46 = vector.broadcast %cst_23 : f32 to vector<64x256xf32>
    %47 = arith.mulf %46, %45 : vector<64x256xf32>
    %48 = arith.mulf %40, %47 : vector<64x256xf32>
    %c0_24 = arith.constant 0 : index
    %c0_25 = arith.constant 0 : index
    %49 = vector.load %arg8[%c0_24, %c0_25] : memref<64x64xf32, #tpu.memory_space<vmem>>, vector<64x64xf32>
    %cst_26 = arith.constant dense<0.000000e+00> : vector<64x256xf32>
    %50 = tpu.matmul %49, %48, %cst_26 {dimension_numbers = #tpu.dot_dimension_numbers<[1], [0], [0], [1], [0, 0, 1, 1], [], []>} : vector<64x64xf32>, vector<64x256xf32>, vector<64x256xf32> -> vector<64x256xf32>
    %c0_27 = arith.constant 0 : index
    %c0_28 = arith.constant 0 : index
    %51 = vector.load %arg9[%c0_27, %c0_28] : memref<64x1xf32, #tpu.memory_space<vmem>>, vector<64x1xf32>
    %52 = vector.broadcast %51 : vector<64x1xf32> to vector<64x256xf32>
    %53 = arith.addf %50, %52 : vector<64x256xf32>
    %cst_29 = arith.constant 3.000000e+01 : f32
    %54 = vector.broadcast %cst_29 : f32 to vector<64x256xf32>
    %55 = arith.mulf %54, %53 : vector<64x256xf32>
    %56 = math.tanh %55 : vector<64x256xf32>
    %57 = arith.addf %53, %56 : vector<64x256xf32>
    %cst_30 = arith.constant 5.000000e-01 : f32
    %58 = vector.broadcast %cst_30 : f32 to vector<64x256xf32>
    %59 = arith.mulf %58, %53 : vector<64x256xf32>
    %60 = math.tanh %59 : vector<64x256xf32>
    %cst_31 = arith.constant 1.000000e+00 : f32
    %61 = vector.broadcast %cst_31 : f32 to vector<64x256xf32>
    %62 = arith.addf %61, %60 : vector<64x256xf32>
    %cst_32 = arith.constant 5.000000e-01 : f32
    %63 = vector.broadcast %cst_32 : f32 to vector<64x256xf32>
    %64 = arith.mulf %63, %62 : vector<64x256xf32>
    %65 = arith.mulf %57, %64 : vector<64x256xf32>
    %c0_33 = arith.constant 0 : index
    %c0_34 = arith.constant 0 : index
    %66 = vector.load %arg10[%c0_33, %c0_34] : memref<64x64xf32, #tpu.memory_space<vmem>>, vector<64x64xf32>
    %cst_35 = arith.constant dense<0.000000e+00> : vector<64x256xf32>
    %67 = tpu.matmul %66, %65, %cst_35 {dimension_numbers = #tpu.dot_dimension_numbers<[1], [0], [0], [1], [0, 0, 1, 1], [], []>} : vector<64x64xf32>, vector<64x256xf32>, vector<64x256xf32> -> vector<64x256xf32>
    %c0_36 = arith.constant 0 : index
    %c0_37 = arith.constant 0 : index
    %68 = vector.load %arg11[%c0_36, %c0_37] : memref<64x1xf32, #tpu.memory_space<vmem>>, vector<64x1xf32>
    %69 = vector.broadcast %68 : vector<64x1xf32> to vector<64x256xf32>
    %70 = arith.addf %67, %69 : vector<64x256xf32>
    %cst_38 = arith.constant 3.000000e+01 : f32
    %71 = vector.broadcast %cst_38 : f32 to vector<64x256xf32>
    %72 = arith.mulf %71, %70 : vector<64x256xf32>
    %73 = math.tanh %72 : vector<64x256xf32>
    %74 = arith.addf %70, %73 : vector<64x256xf32>
    %cst_39 = arith.constant 5.000000e-01 : f32
    %75 = vector.broadcast %cst_39 : f32 to vector<64x256xf32>
    %76 = arith.mulf %75, %70 : vector<64x256xf32>
    %77 = math.tanh %76 : vector<64x256xf32>
    %cst_40 = arith.constant 1.000000e+00 : f32
    %78 = vector.broadcast %cst_40 : f32 to vector<64x256xf32>
    %79 = arith.addf %78, %77 : vector<64x256xf32>
    %cst_41 = arith.constant 5.000000e-01 : f32
    %80 = vector.broadcast %cst_41 : f32 to vector<64x256xf32>
    %81 = arith.mulf %80, %79 : vector<64x256xf32>
    %82 = arith.mulf %74, %81 : vector<64x256xf32>
    %c0_42 = arith.constant 0 : index
    %c0_43 = arith.constant 0 : index
    %83 = vector.load %arg12[%c0_42, %c0_43] : memref<12x64xf32, #tpu.memory_space<vmem>>, vector<12x64xf32>
    %cst_44 = arith.constant dense<0.000000e+00> : vector<12x256xf32>
    %84 = tpu.matmul %83, %82, %cst_44 {dimension_numbers = #tpu.dot_dimension_numbers<[1], [0], [0], [1], [0, 0, 1, 1], [], []>} : vector<12x64xf32>, vector<64x256xf32>, vector<12x256xf32> -> vector<12x256xf32>
    %c0_45 = arith.constant 0 : index
    %c0_46 = arith.constant 0 : index
    %85 = vector.load %arg13[%c0_45, %c0_46] : memref<12x1xf32, #tpu.memory_space<vmem>>, vector<12x1xf32>
    %86 = vector.broadcast %85 : vector<12x1xf32> to vector<12x256xf32>
    %87 = arith.addf %84, %86 : vector<12x256xf32>
    %cst_47 = arith.constant 3.000000e+01 : f32
    %88 = vector.broadcast %cst_47 : f32 to vector<12x256xf32>
    %89 = arith.mulf %88, %87 : vector<12x256xf32>
    %90 = math.tanh %89 : vector<12x256xf32>
    %91 = arith.addf %87, %90 : vector<12x256xf32>
    %cst_48 = arith.constant 5.000000e-01 : f32
    %92 = vector.broadcast %cst_48 : f32 to vector<12x256xf32>
    %93 = arith.mulf %92, %87 : vector<12x256xf32>
    %94 = math.tanh %93 : vector<12x256xf32>
    %cst_49 = arith.constant 1.000000e+00 : f32
    %95 = vector.broadcast %cst_49 : f32 to vector<12x256xf32>
    %96 = arith.addf %95, %94 : vector<12x256xf32>
    %cst_50 = arith.constant 5.000000e-01 : f32
    %97 = vector.broadcast %cst_50 : f32 to vector<12x256xf32>
    %98 = arith.mulf %97, %96 : vector<12x256xf32>
    %99 = arith.mulf %91, %98 : vector<12x256xf32>
    %c0_51 = arith.constant 0 : index
    %c0_52 = arith.constant 0 : index
    %100 = vector.load %arg14[%c0_51, %c0_52] : memref<3x12xf32, #tpu.memory_space<vmem>>, vector<3x12xf32>
    %cst_53 = arith.constant dense<0.000000e+00> : vector<3x256xf32>
    %101 = tpu.matmul %100, %99, %cst_53 {dimension_numbers = #tpu.dot_dimension_numbers<[1], [0], [0], [1], [0, 0, 1, 1], [], []>} : vector<3x12xf32>, vector<12x256xf32>, vector<3x256xf32> -> vector<3x256xf32>
    %c0_54 = arith.constant 0 : index
    %c0_55 = arith.constant 0 : index
    %102 = vector.load %arg15[%c0_54, %c0_55] : memref<3x1xf32, #tpu.memory_space<vmem>>, vector<3x1xf32>
    %103 = vector.broadcast %102 : vector<3x1xf32> to vector<3x256xf32>
    %104 = arith.addf %101, %103 : vector<3x256xf32>
    %c0_56 = arith.constant 0 : index
    %105 = arith.index_cast %1 : i32 to index
    %106 = vector.load %arg16[%c0_56, %105] : memref<3x256xf32, #tpu.memory_space<vmem>>, vector<3x256xf32>
    tpu.vector_store %arg16[%c0_56, %105], %104 {strides = array<i32>} : memref<3x256xf32, #tpu.memory_space<vmem>>, vector<3x256xf32>,
    %c1_i32 = arith.constant 1 : i32
    return
  }
  func.func @transform_0(%arg0: i32) -> (i32, i32) {
    %c0_i32 = arith.constant 0 : i32
    %c0_i32_0 = arith.constant 0 : i32
    return %c0_i32, %arg0 : i32, i32
  }
  func.func @transform_1(%arg0: i32) -> (i32, i32) {
    %c0_i32 = arith.constant 0 : i32
    %c0_i32_0 = arith.constant 0 : i32
    %c0_i32_1 = arith.constant 0 : i32
    return %c0_i32, %c0_i32_0 : i32, i32
  }
  func.func @transform_2(%arg0: i32) -> (i32, i32) {
    %c0_i32 = arith.constant 0 : i32
    %c0_i32_0 = arith.constant 0 : i32
    %c0_i32_1 = arith.constant 0 : i32
    return %c0_i32, %c0_i32_0 : i32, i32
  }
  func.func @transform_3(%arg0: i32) -> (i32, i32) {
    %c0_i32 = arith.constant 0 : i32
    %c0_i32_0 = arith.constant 0 : i32
    %c0_i32_1 = arith.constant 0 : i32
    return %c0_i32, %c0_i32_0 : i32, i32
  }
  func.func @transform_4(%arg0: i32) -> (i32, i32) {
    %c0_i32 = arith.constant 0 : i32
    %c0_i32_0 = arith.constant 0 : i32
    %c0_i32_1 = arith.constant 0 : i32
    return %c0_i32, %c0_i32_0 : i32, i32
  }
  func.func @transform_5(%arg0: i32) -> (i32, i32) {
    %c0_i32 = arith.constant 0 : i32
    %c0_i32_0 = arith.constant 0 : i32
    %c0_i32_1 = arith.constant 0 : i32
    return %c0_i32, %c0_i32_0 : i32, i32
  }
  func.func @transform_6(%arg0: i32) -> (i32, i32) {
    %c0_i32 = arith.constant 0 : i32
    %c0_i32_0 = arith.constant 0 : i32
    %c0_i32_1 = arith.constant 0 : i32
    return %c0_i32, %c0_i32_0 : i32, i32
  }
  func.func @transform_7(%arg0: i32) -> (i32, i32) {
    %c0_i32 = arith.constant 0 : i32
    %c0_i32_0 = arith.constant 0 : i32
    %c0_i32_1 = arith.constant 0 : i32
    return %c0_i32, %c0_i32_0 : i32, i32
  }
  func.func @transform_8(%arg0: i32) -> (i32, i32) {
    %c0_i32 = arith.constant 0 : i32
    %c0_i32_0 = arith.constant 0 : i32
    %c0_i32_1 = arith.constant 0 : i32
    return %c0_i32, %c0_i32_0 : i32, i32
  }
  func.func @transform_9(%arg0: i32) -> (i32, i32) {
    %c0_i32 = arith.constant 0 : i32
    %c0_i32_0 = arith.constant 0 : i32
    %c0_i32_1 = arith.constant 0 : i32
    return %c0_i32, %c0_i32_0 : i32, i32
  }
  func.func @transform_10(%arg0: i32) -> (i32, i32) {
    %c0_i32 = arith.constant 0 : i32
    %c0_i32_0 = arith.constant 0 : i32
    %c0_i32_1 = arith.constant 0 : i32
    return %c0_i32, %c0_i32_0 : i32, i32
  }
  func.func @transform_11(%arg0: i32) -> (i32, i32) {
    %c0_i32 = arith.constant 0 : i32
    %c0_i32_0 = arith.constant 0 : i32
    %c0_i32_1 = arith.constant 0 : i32
    return %c0_i32, %c0_i32_0 : i32, i32
  }
  func.func @transform_12(%arg0: i32) -> (i32, i32) {
    %c0_i32 = arith.constant 0 : i32
    %c0_i32_0 = arith.constant 0 : i32
    %c0_i32_1 = arith.constant 0 : i32
    return %c0_i32, %c0_i32_0 : i32, i32
  }
  func.func @transform_13(%arg0: i32) -> (i32, i32) {
    %c0_i32 = arith.constant 0 : i32
    %c0_i32_0 = arith.constant 0 : i32
    %c0_i32_1 = arith.constant 0 : i32
    return %c0_i32, %c0_i32_0 : i32, i32
  }
  func.func @transform_14(%arg0: i32) -> (i32, i32) {
    %c0_i32 = arith.constant 0 : i32
    %c0_i32_0 = arith.constant 0 : i32
    %c0_i32_1 = arith.constant 0 : i32
    return %c0_i32, %c0_i32_0 : i32, i32
  }
  func.func @transform_15(%arg0: i32) -> (i32, i32) {
    %c0_i32 = arith.constant 0 : i32
    %c0_i32_0 = arith.constant 0 : i32
    return %c0_i32, %arg0 : i32, i32
  }
}

</mosaic_0001>

<bundles_post_ra>
// kernel: tpu_custom_call.1
= control target key start
LH: loop header
LB: loop body
LE: loop exit
PB: predicated region body
PF: predicated region fallthrough
CT: control target
= control target key end

     0   :  { %vm70_vm0 = vcmask 1041408   ;;  %v2925_v2 = vmov 0.0   ;;  %s3832_s0 = inlined_call_operand.vmem [shape: f32[2,256], index: 0, kind: input, shape index: {}]   ;;  %s3833_s1 = inlined_call_operand.vmem [shape: f32[16,2], index: 1, kind: input, shape index: {}]   ;;  %s3834_s2 = inlined_call_operand.vmem [shape: f32[32,16], index: 2, kind: input, shape index: {}]   ;;  %s3835_s3 = inlined_call_operand.vmem [shape: f32[32,16], index: 3, kind: input, shape index: {}]   ;;  %s3836_s4 = inlined_call_operand.vmem [shape: f32[32,1], index: 4, kind: input, shape index: {}]   ;;  %s3837_s5 = inlined_call_operand.vmem [shape: f32[64,32], index: 5, kind: input, shape index: {}]   ;;  %s3838_s6 = inlined_call_operand.vmem [shape: f32[64,1], index: 6, kind: input, shape index: {}]   ;;  %s3839_s7 = inlined_call_operand.vmem [shape: f32[64,64], index: 7, kind: input, shape index: {}]   ;;  %s3840_s8 = inlined_call_operand.vmem [shape: f32[64,1], index: 8, kind: input, shape index: {}]   ;;  %s3841_s9 = inlined_call_operand.vmem [shape: f32[64,64], index: 9, kind: input, shape index: {}]   ;;  %s3842_s10 = inlined_call_operand.vmem [shape: f32[64,1], index: 10, kind: input, shape index: {}]   ;;  %s3843_s11 = inlined_call_operand.vmem [shape: f32[12,64], index: 11, kind: input, shape index: {}]   ;;  %s3844_s12 = inlined_call_operand.vmem [shape: f32[12,1], index: 12, kind: input, shape index: {}]   ;;  %s3845_s13 = inlined_call_operand.vmem [shape: f32[3,12], index: 13, kind: input, shape index: {}]   ;;  %s3846_s14 = inlined_call_operand.vmem [shape: f32[3,1], index: 14, kind: input, shape index: {}]   ;;  %s3847_s15 = inlined_call_operand.hbm [shape: f32[3,256], index: 15, kind: output, shape index: {}]  }
   0x1   :  { %v2493_v0 = vld.sshfl [vmem:[%s3832_s0] sm:$0x33 pattern:$0x76325410]  ;;  %139 = vmatprep.mubr.f32.mxu0 %v2925_v2  ;;  %1065 = vmatprep.mubr.f32.mxu1 %v2925_v2 }
   0x2   :  { %v62_v1 = vcombine.high %v2493_v0, %v2493_v0 }
   0x3   :  { %20 = vsyncpa [#allocation3], 0  ;;  %v52_v3 = vld [vmem:[%s3833_s1] sm:$0xff]  ;;  %vm63_vm1 = vcmask 15360   ;;  %v53_v4 = vld [vmem:[%s3833_s1 + $0x8] sm:$0xff]  ;;  %s2934_s20 = smov [#allocation2]  }
   0x4   :  { %2494 = vmatprep.subr.msk.mxu0 %vm70_vm0, %v62_v1  ;;  %v2926_v35 = vmov 683565275   ;;  %v2927_v39 = vmov 2475754826   ;;  %v2928_v41 = vmov 2131351028  }
   0x5   :  { %2495 = vmatpush1.msk.msra.mxu0 %vm70_vm0, %v2493_v0  ;;  %v2929_v43 = vmov 2102212464   ;;  %v2930_v45 = vmov 920167782   ;;  %v2931_v52 = vmov 1326507024  }
   0x6   :  { %2496 = vmatmul.mubr.msk.f32.vlgmr.msra.gmra.mrb[0].mxu0 %vm63_vm1, %v52_v3 }
   0x7   :  { %145 = vmatprep.mubr.f32.mxu0 %v2925_v2 }
   0xa   :  { %2497 = vmatmul.mubr.msk.f32.gmra.mrb[2].mxu0 %vm63_vm1, %v53_v4 }
   0xb   :  { %1436 = vmatprep.mubr.f32.mxu0 %v2925_v2 }
  0xd9   :  { %v3028_v5 = vpop.f32.mrb[0].mxu0 }
  0xda   :  { %v156_v6 = vand.u32 2147483647, %v3028_v5  ;;  %v159_v7 = vand.u32 2139095040, %v3028_v5  ;;  %v3032_v8 = vpop.f32.mrb[1].mxu0 }
  0xdb   :  { %v259_v9 = vand.u32 2147483647, %v3032_v8  ;;  %v262_v10 = vand.u32 2139095040, %v3032_v8 }
  0xdc   :  { %v160_v11 = vshrl.u32 %v159_v7, 23  ;;  %v163_v12 = vand.u32 8388607, %v156_v6 }
  0xdd   :  { %v263_v13 = vshrl.u32 %v262_v10, 23  ;;  %v266_v14 = vand.u32 8388607, %v259_v9  ;;  %v3040_v15 = vpop.f32.mrb[2].mxu0 }
  0xde   :  { %v2498_v16 = vadd.s32 4294967169, %v160_v11  ;;  %v3042_v17 = vpop.f32.mrb[3].mxu0  ;;  %v365_v19 = vand.u32 2139095040, %v3040_v15  ;;  %v164_v21 = vor.u32 8388608, %v163_v12  ;;  %v362_v33 = vand.u32 2147483647, %v3040_v15 }
  0xdf   :  { %v2502_v18 = vadd.s32 4294967169, %v263_v13  ;;  %v267_v22 = vor.u32 8388608, %v266_v14 }
  0xe0   :  { %v166_v20 = vadd.s32 1, %v2498_v16  ;;  %v366_v24 = vshrl.u32 %v365_v19, 23  ;;  %v3045_v30 = vshll.u32 %v164_v21, 8 }
  0xe1   :  { %v269_v23 = vadd.s32 1, %v2502_v18  ;;  %v3049_v32 = vshll.u32 %v267_v22, 8 }
  0xe2   :  { %vm167_vm2 = vcmp.gt.s32.totalorder %v166_v20, 0  ;;  %v2506_v26 = vadd.s32 4294967169, %v366_v24 }
  0xe3   :  { %v168_v25 = vsel %vm167_vm2, %v166_v20, 0  ;;  %vm270_vm3 = vcmp.gt.s32.totalorder %v269_v23, 0 }
  0xe4   :  { %v169_v27 = vshrl.u32 %v168_v25, 5  ;;  %v170_v28 = vand.u32 31, %v168_v25  ;;  %v271_v29 = vsel %vm270_vm3, %v269_v23, 0  ;;  %v3053_v38 = vadd.s32 1, %v2506_v26 }
  0xe5   :  { %v3047_v31 = vshrl.u32 %v271_v29, 5  ;;  %v273_v37 = vand.u32 31, %v271_v29 }
  0xe6   :  { %v171_v34 = vsub.s32 32, %v170_v28  ;;  %v173_v36 = vshll.u32 %v2926_v35, %v170_v28  ;;  %v176_v40 = vshll.u32 %v2927_v39, %v170_v28  ;;  %v179_v42 = vshll.u32 %v2928_v41, %v170_v28 }
  0xe7   :  { %v182_v44 = vshll.u32 %v2929_v43, %v170_v28  ;;  %v185_v46 = vshll.u32 %v2930_v45, %v170_v28  ;;  %vm188_vm4 = vcmp.lt.s32.totalorder %v169_v27, 1  ;;  %vm189_vm5 = vcmp.lt.s32.totalorder %v169_v27, 2 }
  0xe8   :  { %v174_v47 = vshrl.u32 %v2927_v39, %v171_v34  ;;  %v177_v48 = vshrl.u32 %v2928_v41, %v171_v34  ;;  %v180_v49 = vshrl.u32 %v2929_v43, %v171_v34  ;;  %v172_v50 = vshrl.u32 %v2926_v35, %v171_v34 }
  0xe9   :  { %v183_v51 = vshrl.u32 %v2930_v45, %v171_v34  ;;  %v186_v53 = vshrl.u32 %v2931_v52, %v171_v34  ;;  %v274_v57 = vsub.s32 32, %v273_v37  ;;  %vm190_vm6 = vcmp.lt.s32.totalorder %v169_v27, 3 }
  0xea   :  { %v175_v54 = vor.u32 %v174_v47, %v173_v36  ;;  %v178_v55 = vor.u32 %v177_v48, %v176_v40  ;;  %v181_v56 = vor.u32 %v180_v49, %v179_v42  ;;  %vm191_vm7 = vcmp.lt.s32.totalorder %v169_v27, 4 }
  0xeb   :  { %v184_v58 = vor.u32 %v183_v51, %v182_v44  ;;  %v187_v59 = vor.u32 %v186_v53, %v185_v46  ;;  %v276_v4 = vshll.u32 %v2926_v35, %v273_v37  ;;  %v277_v11 = vshrl.u32 %v2927_v39, %v274_v57 }
  0xec   :  { %v192_v60 = vsel %vm188_vm4, %v172_v50, %v175_v54  ;;  %v193_v61 = vsel %vm191_vm7, %v181_v56, 2102212464  ;;  %v196_v62 = vsel %vm188_vm4, %v175_v54, %v178_v55  ;;  %v200_v63 = vsel %vm188_vm4, %v178_v55, %v181_v56 }
  0xed   :  { %v194_v0 = vsel %vm190_vm6, %v178_v55, %v193_v61  ;;  %v197_v1 = vsel %vm191_vm7, %v184_v58, 920167782  ;;  %v201_v3 = vsel %vm191_vm7, %v187_v59, 1326507024  ;;  %v279_v12 = vshll.u32 %v2927_v39, %v273_v37 }
  0xee   :  { %v198_v7 = vsel %vm190_vm6, %v181_v56, %v197_v1  ;;  %v202_v10 = vsel %vm190_vm6, %v184_v58, %v201_v3  ;;  %v195_v13 = vsel %vm189_vm5, %v192_v60, %v194_v0  ;;  %v280_v18 = vshrl.u32 %v2928_v41, %v274_v57 }
  0xef   :  { %v199_v14 = vsel %vm189_vm5, %v196_v62, %v198_v7  ;;  %v203_v16 = vsel %vm189_vm5, %v200_v63, %v202_v10  ;;  %v278_v23 = vor.u32 %v277_v11, %v276_v4  ;;  %v282_v25 = vshll.u32 %v2928_v41, %v273_v37 }
  0xf0   :  { %v3076_v19 = vmul.u32.u64.low %v3045_v30, %v203_v16  ;;  %v3077_v20 = vmul.u32.u64.high %v3045_v30, %v203_v16, %v3076_v19  ;;  %v3080_v21 = vmul.u32.u64.low %v3045_v30, %v199_v14  ;;  %v3081_v22 = vmul.u32.u64.high %v3045_v30, %v199_v14, %v3080_v21 }
  0xf1   :  { %v281_v24 = vor.u32 %v280_v18, %v279_v12  ;;  %v283_v26 = vshrl.u32 %v2929_v43, %v274_v57  ;;  %v275_v27 = vshrl.u32 %v2926_v35, %v274_v57  ;;  %v285_v28 = vshll.u32 %v2929_v43, %v273_v37 }
  0xf2   :  { %v286_v29 = vshrl.u32 %v2930_v45, %v274_v57  ;;  %v289_v34 = vshrl.u32 %v2931_v52, %v274_v57  ;;  %v211_v36 = vmul.u32 %v3045_v30, %v195_v13  ;;  %v288_v42 = vshll.u32 %v2930_v45, %v273_v37 }
  0xf3   :  { %v284_v40 = vor.u32 %v283_v26, %v282_v25  ;;  %vm291_vm8 = vcmp.lt.s32.totalorder %v3047_v31, 1  ;;  %vm213_vm9 = vc.u32 %v3077_v20, %v3080_v21  ;;  %v214_v44 = vadd.s32 1, %v3081_v22 }
  0xf4   :  { %v287_v46 = vor.u32 %v286_v29, %v285_v28  ;;  %vm292_vm10 = vcmp.lt.s32.totalorder %v3047_v31, 2  ;;  %v290_v47 = vor.u32 %v289_v34, %v288_v42  ;;  %vm293_vm11 = vcmp.lt.s32.totalorder %v3047_v31, 3 }
  0xf5   :  { %vm294_vm12 = vcmp.lt.s32.totalorder %v3047_v31, 4  ;;  %v299_v48 = vsel %vm291_vm8, %v278_v23, %v281_v24  ;;  %v215_v30 = vsel %vm213_vm9, %v214_v44, %v3081_v22  ;;  %v303_v50 = vsel %vm291_vm8, %v281_v24, %v284_v40 }
  0xf6   :  { %v296_v49 = vsel %vm294_vm12, %v284_v40, 2102212464  ;;  %v300_v37 = vsel %vm294_vm12, %v287_v46, 920167782  ;;  %v216_v51 = vadd.s32 %v215_v30, %v211_v36  ;;  %v295_v53 = vsel %vm291_vm8, %v275_v27, %v278_v23 }
  0xf7   :  { %v301_v54 = vsel %vm293_vm11, %v284_v40, %v300_v37  ;;  %v304_v55 = vsel %vm294_vm12, %v290_v47, 1326507024  ;;  %v297_v56 = vsel %vm293_vm11, %v281_v24, %v296_v49  ;;  %vm373_vm13 = vcmp.gt.s32.totalorder %v3053_v38, 0 }
  0xf8   :  { %v302_v57 = vsel %vm292_vm10, %v299_v48, %v301_v54  ;;  %v305_v58 = vsel %vm293_vm11, %v287_v46, %v304_v55  ;;  %v217_v59 = vadd.s32 536870912, %v216_v51  ;;  %v369_v1 = vand.u32 8388607, %v362_v33 }
  0xf9   :  { %v306_v60 = vsel %vm292_vm10, %v303_v50, %v305_v58  ;;  %v3106_v61 = vmul.u32.u64.low %v3049_v32, %v302_v57  ;;  %v3107_v62 = vmul.u32.u64.high %v3049_v32, %v302_v57, %v3106_v61  ;;  %v374_v3 = vsel %vm373_vm13, %v3053_v38, 0 }
  0xfa   :  { %v3111_v63 = vmul.u32.u64.low %v3049_v32, %v306_v60  ;;  %v3112_v0 = vmul.u32.u64.high %v3049_v32, %v306_v60, %v3111_v63  ;;  %v3117_v4 = vshrl.u32 %v217_v59, 30  ;;  %v298_v7 = vsel %vm292_vm10, %v295_v53, %v297_v56 }
  0xfb   :  { %v376_v10 = vand.u32 31, %v374_v3  ;;  %v468_v11 = vand.u32 2139095040, %v3042_v17  ;;  %v317_v13 = vadd.s32 1, %v3107_v62  ;;  %v314_v16 = vmul.u32 %v3049_v32, %v298_v7 }
  0xfc   :  { %v219_v12 = vshll.u32 %v3117_v4, 30  ;;  %vm316_vm14 = vc.u32 %v3112_v0, %v3106_v61  ;;  %v370_v18 = vor.u32 8388608, %v369_v1  ;;  %v375_v31 = vshrl.u32 %v374_v3, 5 }
  0xfd   :  { %v377_v14 = vsub.s32 32, %v376_v10  ;;  %v318_v19 = vsel %vm316_vm14, %v317_v13, %v3107_v62  ;;  %v469_v22 = vshrl.u32 %v468_v11, 23  ;;  %v379_v24 = vshll.u32 %v2926_v35, %v376_v10 }
  0xfe   :  { %v3127_v38 = vsub.s32 %v216_v51, %v219_v12  ;;  %v319_v23 = vadd.s32 %v318_v19, %v314_v16  ;;  %v382_v32 = vshll.u32 %v2927_v39, %v376_v10  ;;  %v385_v28 = vshll.u32 %v2928_v41, %v376_v10 }
  0xff   :  { %v380_v25 = vshrl.u32 %v2927_v39, %v377_v14  ;;  %v383_v26 = vshrl.u32 %v2928_v41, %v377_v14  ;;  %v386_v29 = vshrl.u32 %v2929_v43, %v377_v14  ;;  %v388_v40 = vshll.u32 %v2929_v43, %v376_v10 }
 0x100   :  { %v222_v27 = vsub.s32 0, %v3127_v38  ;;  %v320_v34 = vadd.s32 536870912, %v319_v23  ;;  %v389_v42 = vshrl.u32 %v2930_v45, %v377_v14  ;;  %v391_v47 = vshll.u32 %v2930_v45, %v376_v10 }
 0x101   :  { %v381_v36 = vor.u32 %v380_v25, %v379_v24  ;;  %v384_v46 = vor.u32 %v383_v26, %v382_v32  ;;  %v392_v48 = vshrl.u32 %v2931_v52, %v377_v14  ;;  %v387_v49 = vor.u32 %v386_v29, %v385_v28 }
 0x102   :  { %v2499_v44 = vmin.u32 %v222_v27, %v3127_v38  ;;  %v3142_v30 = vshrl.u32 %v320_v34, 30  ;;  %v390_v37 = vor.u32 %v389_v42, %v388_v40  ;;  %v410_v53 = vshll.u32 %v370_v18, 8 }
 0x103   :  { %v393_v51 = vor.u32 %v392_v48, %v391_v47  ;;  %vm394_vm15 = vcmp.lt.s32.totalorder %v375_v31, 1  ;;  %vm397_vm0 = vcmp.lt.s32.totalorder %v375_v31, 4  ;;  %v2510_v55 = vadd.s32 4294967169, %v469_v22 }
 0x104   :  { %v224_v50 = vclz %v2499_v44  ;;  %v322_v54 = vshll.u32 %v3142_v30, 30  ;;  %vm396_vm1 = vcmp.lt.s32.totalorder %v375_v31, 3  ;;  %v402_v57 = vsel %vm394_vm15, %v381_v36, %v384_v46 }
 0x105   :  { %v403_v58 = vsel %vm397_vm0, %v390_v37, 920167782  ;;  %v378_v60 = vshrl.u32 %v2926_v35, %v377_v14  ;;  %v399_v62 = vsel %vm397_vm0, %v387_v49, 2102212464  ;;  %vm395_vm3 = vcmp.lt.s32.totalorder %v375_v31, 2 }
 0x106   :  { %v2500_v56 = vadd.s32 4294967294, %v224_v50  ;;  %v3146_v59 = vsub.s32 %v319_v23, %v322_v54  ;;  %v404_v63 = vsel %vm396_vm1, %v387_v49, %v403_v58  ;;  %v406_v1 = vsel %vm394_vm15, %v384_v46, %v387_v49 }
 0x107   :  { %v407_v3 = vsel %vm397_vm0, %v393_v51, 1326507024  ;;  %v405_v11 = vsel %vm395_vm3, %v402_v57, %v404_v63  ;;  %v398_v16 = vsel %vm394_vm15, %v378_v60, %v381_v36  ;;  %v400_v14 = vsel %vm396_vm1, %v384_v46, %v399_v62 }
 0x108   :  { %vm2501_vm2 = vcmp.lt.s32.totalorder %v2500_v56, 0  ;;  %v325_v10 = vsub.s32 0, %v3146_v59  ;;  %v408_v12 = vsel %vm396_vm1, %v390_v37, %v407_v3  ;;  %v475_v24 = vadd.s32 1, %v2510_v55 }
 0x109   :  { %v227_v7 = vsel %vm2501_vm2, 0, %v2500_v56  ;;  %v409_v18 = vsel %vm395_vm3, %v406_v1, %v408_v12  ;;  %v3161_v26 = vmul.u32.u64.low %v410_v53, %v405_v11  ;;  %v3162_v27 = vmul.u32.u64.high %v410_v53, %v405_v11, %v3161_v26 }
 0x10a   :  { %v232_v13 = vsub.s32 4294967266, %v227_v7  ;;  %v2503_v19 = vmin.u32 %v325_v10, %v3146_v59  ;;  %v3158_v22 = vmul.u32.u64.low %v410_v53, %v409_v18  ;;  %v3159_v23 = vmul.u32.u64.high %v410_v53, %v409_v18, %v3158_v22 }
 0x10b   :  { %v465_v28 = vand.u32 2147483647, %v3042_v17  ;;  %vm476_vm4 = vcmp.gt.s32.totalorder %v475_v24, 0  ;;  %v228_v29 = vsub.s32 32, %v227_v7  ;;  %v401_v34 = vsel %vm395_vm3, %v398_v16, %v400_v14 }
 0x10c   :  { %v233_v25 = vadd.s32 127, %v232_v13  ;;  %v327_v32 = vclz %v2503_v19  ;;  %v477_v36 = vsel %vm476_vm4, %v475_v24, 0  ;;  %vm419_vm5 = vc.u32 %v3159_v23, %v3161_v26 }
 0x10d   :  { %v212_v44 = vadd.s32 %v3080_v21, %v3077_v20  ;;  %v420_v46 = vadd.s32 1, %v3162_v27  ;;  %v479_v47 = vand.u32 31, %v477_v36  ;;  %v417_v48 = vmul.u32 %v410_v53, %v401_v34 }
 0x10e   :  { %v234_v40 = vshll.u32 %v233_v25, 23  ;;  %v2504_v42 = vadd.s32 4294967294, %v327_v32  ;;  %v472_v49 = vand.u32 8388607, %v465_v28  ;;  %v229_v55 = vshll.u32 %v3127_v38, %v227_v7 }
 0x10f   :  { %v230_v37 = vshrl.u32 %v212_v44, %v228_v29  ;;  %v421_v31 = vsel %vm419_vm5, %v420_v46, %v3162_v27  ;;  %v480_v50 = vsub.s32 32, %v479_v47  ;;  %v478_v63 = vshrl.u32 %v477_v36, 5 }
 0x110   :  { %v235_v51 = vor.u32 4788187, %v234_v40  ;;  %vm2505_vm6 = vcmp.lt.s32.totalorder %v2504_v42, 0  ;;  %v422_v54 = vadd.s32 %v421_v31, %v417_v48  ;;  %v473_v57 = vor.u32 8388608, %v472_v49 }
 0x111   :  { %v231_v58 = vor.u32 %v230_v37, %v229_v55  ;;  %v3176_v20 = vsel %vm2505_vm6, 0, %v2504_v42  ;;  %v483_v21 = vshrl.u32 %v2927_v39, %v480_v50  ;;  %v486_v53 = vshrl.u32 %v2928_v41, %v480_v50 }
 0x112   :  { %v423_v56 = vadd.s32 536870912, %v422_v54  ;;  %v236_v60 = vand.u32 2147483647, %v235_v51  ;;  %v489_v1 = vshrl.u32 %v2929_v43, %v480_v50  ;;  %v482_v3 = vshll.u32 %v2926_v35, %v479_v47 }
 0x113   :  { %v485_v10 = vshll.u32 %v2927_v39, %v479_v47  ;;  %v491_v38 = vshll.u32 %v2929_v43, %v479_v47  ;;  %v492_v7 = vshrl.u32 %v2930_v45, %v480_v50  ;;  %v315_v11 = vadd.s32 %v3106_v61, %v3112_v0 }
 0x114   :  { %v3180_v62 = vshrl.u32 %v423_v56, 30  ;;  %v335_v12 = vsub.s32 4294967266, %v3176_v20  ;;  %v488_v16 = vshll.u32 %v2928_v41, %v479_v47  ;;  %v238_v14 = vcvt.s32.f32 %v231_v58 }
 0x115   :  { %v484_v18 = vor.u32 %v483_v21, %v482_v3  ;;  %v487_v19 = vor.u32 %v486_v53, %v485_v10  ;;  %v493_v22 = vor.u32 %v492_v7, %v491_v38  ;;  %vm497_vm7 = vcmp.lt.s32.totalorder %v478_v63, 1 }
 0x116   :  { %v425_v13 = vshll.u32 %v3180_v62, 30  ;;  %v490_v25 = vor.u32 %v489_v1, %v488_v16  ;;  %v513_v39 = vshll.u32 %v473_v57, 8  ;;  %v239_v43 = vmul.f32 %v238_v14, %v236_v60 }
 0x117   :  { %v494_v27 = vshll.u32 %v2930_v45, %v479_v47  ;;  %v495_v32 = vshrl.u32 %v2931_v52, %v480_v50  ;;  %vm498_vm8 = vcmp.lt.s32.totalorder %v478_v63, 2  ;;  %v336_v61 = vadd.s32 127, %v335_v12 }
 0x118   :  { %v426_v24 = vsub.s32 %v422_v54, %v425_v13  ;;  %vm499_vm9 = vcmp.lt.s32.totalorder %v478_v63, 3  ;;  %vm500_vm10 = vcmp.lt.s32.totalorder %v478_v63, 4  ;;  %v331_v41 = vsub.s32 32, %v3176_v20 }
 0x119   :  { %v496_v29 = vor.u32 %v495_v32, %v494_v27  ;;  %v505_v34 = vsel %vm497_vm7, %v484_v18, %v487_v19  ;;  %v506_v36 = vsel %vm500_vm10, %v493_v22, 920167782  ;;  %v481_v42 = vshrl.u32 %v2926_v35, %v480_v50 }
 0x11a   :  { %v428_v0 = vsub.s32 0, %v426_v24  ;;  %v502_v44 = vsel %vm500_vm10, %v490_v25, 2102212464  ;;  %v507_v46 = vsel %vm499_vm9, %v490_v25, %v506_v36  ;;  %v240_v45 = vxor.u32 2147483648, %v239_v43 }
 0x11b   :  { %v508_v52 = vsel %vm498_vm8, %v505_v34, %v507_v46  ;;  %v509_v47 = vsel %vm497_vm7, %v487_v19, %v490_v25  ;;  %v510_v48 = vsel %vm500_vm10, %v496_v29, 1326507024  ;;  %v337_v49 = vshll.u32 %v336_v61, 23  ;;  %v1192_v46 = vld [vmem:[%s3836_s4 + $0x8] sm:$0xff] }
 0x11c   :  { %v2507_v40 = vmin.u32 %v428_v0, %v426_v24  ;;  %v501_v31 = vsel %vm497_vm7, %v481_v42, %v484_v18  ;;  %v511_v51 = vsel %vm499_vm9, %v493_v22, %v510_v48  ;;  %v503_v54 = vsel %vm499_vm9, %v487_v19, %v502_v44 }
 0x11d   :  { %v512_v55 = vsel %vm498_vm8, %v509_v47, %v511_v51  ;;  %v3204_v35 = vmul.u32.u64.low %v513_v39, %v508_v52  ;;  %v3205_v50 = vmul.u32.u64.high %v513_v39, %v508_v52, %v3204_v35  ;;  %vm158_vm11 = vcmp.lt.s32.totalorder %v3028_v5, 0  ;;  %v1299_v51 = vld [vmem:[%s3838_s6] sm:$0xff] }
 0x11e   :  { %v430_v37 = vclz %v2507_v40  ;;  %v3208_v57 = vmul.u32.u64.low %v513_v39, %v512_v55  ;;  %v3209_v58 = vmul.u32.u64.high %v513_v39, %v512_v55, %v3208_v57  ;;  %v333_v21 = vshrl.u32 %v315_v11, %v331_v41 }
 0x11f   :  { %v241_v53 = vsel %vm158_vm11, %v240_v45, %v239_v43  ;;  %v504_v60 = vsel %vm498_vm8, %v501_v31, %v503_v54  ;;  %v332_v1 = vshll.u32 %v3146_v59, %v3176_v20  ;;  %v338_v3 = vor.u32 4788187, %v337_v49  ;;  %v1194_v45 = vld [vmem:[%s3836_s4 + $0x18] sm:$0xff]  ;;  %v1300_v54 = vld [vmem:[%s3838_s6 + $0x8] sm:$0xff] }
 0x120   :  { %v2508_v56 = vadd.s32 4294967294, %v430_v37  ;;  %v523_v38 = vadd.s32 1, %v3205_v50  ;;  %vm3220_vm13 = vcmp.le.f32.partialorder %v156_v6, 0.7853982  ;;  %v418_v11 = vadd.s32 %v3161_v26, %v3159_v23 }
 0x121   :  { %v244_v63 = vsel %vm3220_vm13, %v3028_v5, %v241_v53  ;;  %v334_v59 = vor.u32 %v333_v21, %v332_v1  ;;  %v520_v20 = vmul.u32 %v513_v39, %v504_v60  ;;  %vm522_vm14 = vc.u32 %v3209_v58, %v3204_v35  ;;  %v1191_v39 = vld [vmem:[%s3836_s4] sm:$0xff] }
 0x122   :  { %vm2509_vm12 = vcmp.lt.s32.totalorder %v2508_v56, 0  ;;  %v524_v18 = vsel %vm522_vm14, %v523_v38, %v3205_v50  ;;  %v339_v19 = vand.u32 2147483647, %v338_v3  ;;  %v242_v26 = vsub.s32 4, %v3117_v4  ;;  %v1301_v38 = vld [vmem:[%s3838_s6 + $0x10] sm:$0xff] }
 0x123   :  { %v433_v10 = vsel %vm2509_vm12, 0, %v2508_v56  ;;  %v525_v22 = vadd.s32 %v524_v18, %v520_v20  ;;  %2673 = vsinq.f32 %v244_v63  ;;  %v341_v43 = vcvt.s32.f32 %v334_v59  ;;  %v1304_v18 = vld [vmem:[%s3838_s6 + $0x28] sm:$0xff] }
 0x124   :  { %v434_v12 = vsub.s32 32, %v433_v10  ;;  %v438_v13 = vsub.s32 4294967266, %v433_v10  ;;  %v435_v16 = vshll.u32 %v426_v24, %v433_v10  ;;  %2675 = vcosq.f32 %v244_v63  ;;  %v1193_v24 = vld [vmem:[%s3836_s4 + $0x10] sm:$0xff] }
 0x125   :  { %v526_v27 = vadd.s32 536870912, %v525_v22  ;;  %v342_v61 = vmul.f32 %v341_v43, %v339_v19  ;;  %v2932_v34 = vmov 0   ;;  %v243_v36 = vsel %vm158_vm11, %v242_v26, %v3117_v4 }
 0x126   :  { %v436_v14 = vshrl.u32 %v418_v11, %v434_v12  ;;  %v439_v6 = vadd.s32 127, %v438_v13  ;;  %2671 = vset.pattern.permute.xlu0 %v2932_v34  ;;  %2672 = vset.pattern.permute.xlu1 %v2932_v34  ;;  %v448_v44 = vsub.s32 4, %v3180_v62  ;;  %v245_v4 = vsel %vm3220_vm13, 0, %v243_v36 }
 0x127   :  { %v3239_v0 = vshrl.u32 %v526_v27, 30  ;;  %1197 = vperm.xlu0 %2671, %v1191_v39   ;;  %1207 = vperm.xlu1 %2672, %v1193_v24   ;;  %v343_v52 = vxor.u32 2147483648, %v342_v61  ;;  %vm364_vm15 = vcmp.lt.s32.totalorder %v3040_v15, 0  ;;  %vm261_vm0 = vcmp.lt.s32.totalorder %v3032_v8, 0 }
 0x128   :  { %v437_v25 = vor.u32 %v436_v14, %v435_v16  ;;  %v440_v23 = vshll.u32 %v439_v6, 23  ;;  %vm363_vm1 = vcmp.le.f32.partialorder %v362_v33, 0.7853982  ;;  %v449_v31 = vsel %vm364_vm15, %v448_v44, %v3180_v62  ;;  %v1303_v6 = vld [vmem:[%s3838_s6 + $0x20] sm:$0xff]  ;;  %v1626_v62 = vld [vmem:[%s3840_s8 + $0x28] sm:$0xff] }
 0x129   :  { %v528_v40 = vshll.u32 %v3239_v0, 30  ;;  %v344_v50 = vsel %vm261_vm0, %v343_v52, %v342_v61  ;;  %v665_v33 = vadd.s32 3, %v245_v4  ;;  %vm3274_vm2 = vcmp.le.f32.partialorder %v259_v9, 0.7853982  ;;  %v1302_v9 = vld [vmem:[%s3838_s6 + $0x18] sm:$0xff]  ;;  %v1305_v61 = vld [vmem:[%s3838_s6 + $0x30] sm:$0xff] }
 0x12a   :  { %v441_v32 = vor.u32 4788187, %v440_v23  ;;  %v444_v29 = vcvt.s32.f32 %v437_v25  ;;  %v451_v53 = vsel %vm363_vm1, 0, %v449_v31  ;;  %v249_v1 = vand.u32 3, %v245_v4  ;;  %v1621_v4 = vld [vmem:[%s3840_s8] sm:$0xff] }
 0x12b   :  { %v3252_v47 = vsub.s32 %v525_v22, %v528_v40  ;;  %1202 = vperm.xlu0 %2671, %v1192_v46   ;;  %1212 = vperm.xlu1 %2672, %v1194_v45   ;;  %v347_v3 = vsel %vm3274_vm2, %v3032_v8, %v344_v50  ;;  %v666_v12 = vand.u32 3, %v665_v33  ;;  %v345_v13 = vsub.s32 4, %v3142_v30 }
 0x12c   :  { %v442_v41 = vand.u32 2147483647, %v441_v32  ;;  %v873_v63 = vadd.s32 3, %v451_v53  ;;  %vm251_vm4 = vcmp.eq.s32.totalorder %v249_v1, 0  ;;  %v455_v59 = vand.u32 3, %v451_v53 }
 0x12d   :  { %v531_v49 = vsub.s32 0, %v3252_v47  ;;  %v2674_v55 = vpop.eup %2673  ;;  %v521_v20 = vadd.s32 %v3204_v35, %v3209_v58  ;;  %vm254_vm5 = vcmp.eq.s32.totalorder %v249_v1, 2  ;;  %vm248_vm6 = vweird.f32 %v3028_v5  ;;  %v1623_v5 = vld [vmem:[%s3840_s8 + $0x10] sm:$0xff] }
 0x12e   :  { %v445_v42 = vmul.f32 %v444_v29, %v442_v41  ;;  %v2676_v21 = vpop.eup %2675  ;;  %v252_v10 = vxor.u32 2147483648, %v2674_v55  ;;  %vm454_vm7 = vweird.f32 %v3040_v15  ;;  %vm668_vm8 = vcmp.eq.s32.totalorder %v666_v12, 0  ;;  %v1306_v41 = vld [vmem:[%s3838_s6 + $0x38] sm:$0xff] }
 0x12f   :  { %v2511_v57 = vmin.u32 %v531_v49, %v3252_v47  ;;  %1309 = vperm.xlu0 %2671, %v1299_v51   ;;  %1314 = vperm.xlu1 %2672, %v1300_v54   ;;  %v255_v11 = vxor.u32 2147483648, %v2676_v21  ;;  %vm250_vm9 = vcmp.lt.s32.totalorder %v249_v1, 2  ;;  %vm671_vm10 = vcmp.eq.s32.totalorder %v666_v12, 2 }
 0x130   :  { %v446_v48 = vxor.u32 2147483648, %v445_v42  ;;  %v253_v14 = vsel %vm251_vm4, %v2676_v21, %v252_v10  ;;  %v670_v35 = vsel %vm668_vm8, %v2676_v21, %v252_v10  ;;  %v874_v58 = vand.u32 3, %v873_v63  ;;  %v1627_v63 = vld [vmem:[%s3840_s8 + $0x30] sm:$0xff] }
 0x131   :  { %v533_v60 = vclz %v2511_v57  ;;  %v256_v25 = vsel %vm254_vm5, %v255_v11, %v2674_v55  ;;  %v673_v27 = vsel %vm671_vm10, %v255_v11, %v2674_v55  ;;  %v346_v39 = vsel %vm261_vm0, %v345_v13, %v3142_v30 }
 0x132   :  { %v447_v37 = vsel %vm364_vm15, %v446_v48, %v445_v42  ;;  %v257_v24 = vsel %vm250_vm9, %v253_v14, %v256_v25  ;;  %vm457_vm11 = vcmp.eq.s32.totalorder %v455_v59, 0  ;;  %vm667_vm12 = vcmp.lt.s32.totalorder %v666_v12, 2  ;;  %v1622_v48 = vld [vmem:[%s3840_s8 + $0x8] sm:$0xff]  ;;  %v1625_v12 = vld [vmem:[%s3840_s8 + $0x20] sm:$0xff] }
 0x133   :  { %v450_v56 = vsel %vm363_vm1, %v3040_v15, %v447_v37  ;;  %v2512_v7 = vadd.s32 4294967294, %v533_v60  ;;  %1319 = vperm.xlu0 %2671, %v1301_v38   ;;  %1324 = vperm.xlu1 %2672, %v1302_v9   ;;  %vm460_vm13 = vcmp.eq.s32.totalorder %v455_v59, 2  ;;  %v674_v44 = vsel %vm667_vm12, %v670_v35, %v673_v27  ;;  %v1624_v15 = vld [vmem:[%s3840_s8 + $0x18] sm:$0xff] }
 0x134   :  { %2677 = vcosq.f32 %v450_v56  ;;  %vm879_vm14 = vcmp.eq.s32.totalorder %v874_v58, 2  ;;  %vm876_vm15 = vcmp.eq.s32.totalorder %v874_v58, 0  ;;  %vm456_vm0 = vcmp.lt.s32.totalorder %v455_v59, 2  ;;  %v1628_v59 = vld [vmem:[%s3840_s8 + $0x38] sm:$0xff] }
 0x135   :  { %2679 = vsinq.f32 %v450_v56  ;;  %vm2513_vm3 = vcmp.lt.s32.totalorder %v2512_v7, 0  ;;  %vm875_vm1 = vcmp.lt.s32.totalorder %v874_v58, 2  ;;  %v3317_v55 = vsel %vm248_vm6, nan, %v257_v24  ;;  %v1946_v24 = vld [vmem:[%s3842_s10 + $0x18] sm:$0xff] }
 0x136   :  { %2681 = vcosq.f32 %v347_v3  ;;  %v536_v16 = vsel %vm2513_vm3, 0, %v2512_v7  ;;  %v3325_v56 = vsel %vm248_vm6, nan, %v674_v44  ;;  %v551_v21 = vsub.s32 4, %v3239_v0 }
 0x137   :  { %v537_v19 = vsub.s32 32, %v536_v16  ;;  %v541_v22 = vsub.s32 4294967266, %v536_v16  ;;  %v538_v23 = vshll.u32 %v3252_v47, %v536_v16  ;;  %1329 = vperm.xlu0 %2671, %v1303_v6   ;;  %1334 = vperm.xlu1 %2672, %v1304_v18   ;;  %2683 = vsinq.f32 %v347_v3  ;;  %v1943_v6 = vld [vmem:[%s3842_s10] sm:$0xff]  ;;  %v1944_v18 = vld [vmem:[%s3842_s10 + $0x8] sm:$0xff] }
 0x138   :  { %v348_v3 = vsel %vm3274_vm2, 0, %v346_v39  ;;  %vm467_vm3 = vcmp.lt.s32.totalorder %v3042_v17, 0  ;;  %vm466_vm4 = vcmp.le.f32.partialorder %v465_v28, 0.7853982  ;;  %v1945_v39 = vld [vmem:[%s3842_s10 + $0x10] sm:$0xff] }
 0x139   :  { %v539_v26 = vshrl.u32 %v521_v20, %v537_v19  ;;  %v542_v43 = vadd.s32 127, %v541_v22  ;;  %v552_v9 = vsel %vm467_vm3, %v551_v21, %v3239_v0  ;;  %v769_v11 = vadd.s32 3, %v348_v3  ;;  %v154_v21 = vld [vmem:[%s3834_s2 + $0x10] sm:$0xff] }
 0x13a   :  { %v554_v13 = vsel %vm466_vm4, 0, %v552_v9  ;;  %v352_v28 = vand.u32 3, %v348_v3 }
 0x13b   :  { %v540_v34 = vor.u32 %v539_v26, %v538_v23  ;;  %v543_v36 = vshll.u32 %v542_v43, 23  ;;  %1339 = vperm.xlu0 %2671, %v1305_v61   ;;  %1344 = vperm.xlu1 %2672, %v1306_v41   ;;  %v770_v0 = vand.u32 3, %v769_v11  ;;  %v977_v14 = vadd.s32 3, %v554_v13 }
 0x13c   :  { %vm354_vm2 = vcmp.eq.s32.totalorder %v352_v28, 0  ;;  %vm357_vm5 = vcmp.eq.s32.totalorder %v352_v28, 2  ;;  %v558_v25 = vand.u32 3, %v554_v13  ;;  %vm353_vm8 = vcmp.lt.s32.totalorder %v352_v28, 2 }
 0x13d   :  { %v544_v30 = vor.u32 4788187, %v543_v36  ;;  %v547_v31 = vcvt.s32.f32 %v540_v34  ;;  %vm772_vm6 = vcmp.eq.s32.totalorder %v770_v0, 0  ;;  %v978_v35 = vand.u32 3, %v977_v14 }
 0x13e   :  { %v2678_v32 = vpop.eup %2677  ;;  %vm771_vm9 = vcmp.lt.s32.totalorder %v770_v0, 2  ;;  %vm563_vm10 = vcmp.eq.s32.totalorder %v558_v25, 2  ;;  %vm560_vm12 = vcmp.eq.s32.totalorder %v558_v25, 0 }
 0x13f   :  { %v2680_v29 = vpop.eup %2679  ;;  %v461_v40 = vxor.u32 2147483648, %v2678_v32  ;;  %v545_v37 = vand.u32 2147483647, %v544_v30  ;;  %1631 = vperm.xlu0 %2671, %v1621_v4   ;;  %1636 = vperm.xlu1 %2672, %v1622_v48   ;;  %v1947_v30 = vld [vmem:[%s3842_s10 + $0x20] sm:$0xff] }
 0x140   :  { %v458_v42 = vxor.u32 2147483648, %v2680_v29  ;;  %v2682_v49 = vpop.eup %2681 }
 0x141   :  { %v462_v46 = vsel %vm460_vm13, %v461_v40, %v2680_v29  ;;  %v881_v45 = vsel %vm879_vm14, %v461_v40, %v2680_v29  ;;  %v548_v33 = vmul.f32 %v547_v31, %v545_v37  ;;  %v2684_v10 = vpop.eup %2683  ;;  %v358_v16 = vxor.u32 2147483648, %v2682_v49  ;;  %v568_v37 = vld [vmem:[%s3835_s3] sm:$0xff] }
 0x142   :  { %v459_v52 = vsel %vm457_vm11, %v2678_v32, %v458_v42  ;;  %v878_v47 = vsel %vm876_vm15, %v2678_v32, %v458_v42  ;;  %v355_v20 = vxor.u32 2147483648, %v2684_v10  ;;  %vm983_vm11 = vcmp.eq.s32.totalorder %v978_v35, 2  ;;  %v2258_v31 = vld [vmem:[%s3844_s12] sm:$0xff] }
 0x143   :  { %v463_v51 = vsel %vm456_vm0, %v459_v52, %v462_v46  ;;  %v882_v54 = vsel %vm875_vm1, %v878_v47, %v881_v45  ;;  %v549_v1 = vxor.u32 2147483648, %v548_v33  ;;  %1641 = vperm.xlu0 %2671, %v1623_v5   ;;  %1646 = vperm.xlu1 %2672, %v1624_v15   ;;  %v359_v22 = vsel %vm357_vm5, %v358_v16, %v2684_v10  ;;  %v1948_v46 = vld [vmem:[%s3842_s10 + $0x28] sm:$0xff] }
 0x144   :  { %v3321_v50 = vsel %vm454_vm7, nan, %v463_v51  ;;  %v3329_v57 = vsel %vm454_vm7, nan, %v882_v54  ;;  %vm775_vm7 = vcmp.eq.s32.totalorder %v770_v0, 2  ;;  %v356_v19 = vsel %vm354_vm2, %v2682_v49, %v355_v20  ;;  %v2259_v51 = vld [vmem:[%s3844_s12 + $0x8] sm:$0xf] }
 0x145   :  { %v2569_v53 = vpack.c.bf16 %v3329_v57, %v3325_v56  ;;  %v2573_v60 = vpack.c.bf16 %v3321_v50, %v3317_v55  ;;  %v550_v38 = vsel %vm467_vm3, %v549_v1, %v548_v33  ;;  %v774_v58 = vsel %vm772_vm6, %v2682_v49, %v355_v20  ;;  %v569_v54 = vld [vmem:[%s3835_s3 + $0x8] sm:$0xff]  ;;  %v2386_v56 = vld [vmem:[%s3846_s14] sm:$0x7]  ;;  %v570_v55 = vld [vmem:[%s3835_s3 + $0x10] sm:$0xff] }
 0x146   :  { %v553_v7 = vsel %vm466_vm4, %v3042_v17, %v550_v38  ;;  %v777_v23 = vsel %vm775_vm7, %v358_v16, %v2684_v10  ;;  %v360_v27 = vsel %vm353_vm8, %v356_v19, %v359_v22  ;;  %vm980_vm13 = vcmp.eq.s32.totalorder %v978_v35, 0  ;;  %v571_v50 = vld [vmem:[%s3835_s3 + $0x18] sm:$0xff]  ;;  %v152_v57 = vld [vmem:[%s3834_s2] sm:$0xff]  ;;  %v153_v33 = vld [vmem:[%s3834_s2 + $0x8] sm:$0xff] }
 0x147   :  { %2685 = vcosq.f32 %v553_v7  ;;  %1651 = vperm.xlu0 %2671, %v1625_v12   ;;  %1656 = vperm.xlu1 %2672, %v1626_v62   ;;  %v778_v41 = vsel %vm771_vm9, %v774_v58, %v777_v23  ;;  %vm559_vm14 = vcmp.lt.s32.totalorder %v558_v25, 2  ;;  %vm979_vm15 = vcmp.lt.s32.totalorder %v978_v35, 2 }
 0x148   :  { %2687 = vsinq.f32 %v553_v7  ;;  %vm351_vm0 = vweird.f32 %v3032_v8  ;;  %vm557_vm1 = vweird.f32 %v3042_v17  ;;  %v1949_v8 = vld [vmem:[%s3842_s10 + $0x30] sm:$0xff]  ;;  %v1950_v17 = vld [vmem:[%s3842_s10 + $0x38] sm:$0xff]  ;;  %vm988_vm3 = vcmask 130048  }
 0x149   :  { %v361_v45 = vsel %vm351_vm0, nan, %v360_v27  ;;  %v779_v47 = vsel %vm351_vm0, nan, %v778_v41  ;;  %vm1347_vm4 = vcmask 261120   ;;  %vm1669_vm2 = vcmask 523264  }
 0x14a   :  { %vm2396_vm5 = vcmask 1043456   ;;  %vm2933_vm6 = vmmov 1   ;;  %vm2392_vm8 = vcmask 97280  }
 0x14b   :  { %1661 = vperm.xlu0 %2671, %v1627_v63   ;;  %1666 = vperm.xlu1 %2672, %v1628_v59   ;;  %vm2632_vm7 = vmpackc.low %vm2396_vm5, %vm2933_vm6 }
 0x14f   :  { %1953 = vperm.xlu0 %2671, %v1943_v6   ;;  %1958 = vperm.xlu1 %2672, %v1944_v18  }
 0x151   :  { %v2686_v26 = vpop.eup %2685 }
 0x152   :  { %v2688_v43 = vpop.eup %2687  ;;  %v564_v32 = vxor.u32 2147483648, %v2686_v26 }
 0x153   :  { %v561_v61 = vxor.u32 2147483648, %v2688_v43  ;;  %1963 = vperm.xlu0 %2671, %v1945_v39   ;;  %1968 = vperm.xlu1 %2672, %v1946_v24  }
 0x154   :  { %v565_v29 = vsel %vm563_vm10, %v564_v32, %v2688_v43  ;;  %v985_v34 = vsel %vm983_vm11, %v564_v32, %v2688_v43 }
 0x155   :  { %v562_v36 = vsel %vm560_vm12, %v2686_v26, %v561_v61  ;;  %v982_v40 = vsel %vm980_vm13, %v2686_v26, %v561_v61 }
 0x156   :  { %v566_v42 = vsel %vm559_vm14, %v562_v36, %v565_v29  ;;  %v986_v44 = vsel %vm979_vm15, %v982_v40, %v985_v34 }
 0x157   :  { %v567_v52 = vsel %vm557_vm1, nan, %v566_v42  ;;  %v987_v4 = vsel %vm557_vm1, nan, %v986_v44  ;;  %1973 = vperm.xlu0 %2671, %v1947_v30   ;;  %1978 = vperm.xlu1 %2672, %v1948_v46  }
 0x158   :  { %v2567_v48 = vpack.c.bf16 %v987_v4, %v779_v47  ;;  %v2571_v49 = vpack.c.bf16 %v567_v52, %v361_v45 }
 0x15a   :  { %2568 = vmatprep.subr.bf16.mxu1 %v2567_v48 }
 0x15b   :  { %2570 = vmatpush1.bf16.msra.mxu1 %v2569_v53  ;;  %1983 = vperm.xlu0 %2671, %v1949_v8   ;;  %v155_v53 = vld [vmem:[%s3834_s2 + $0x18] sm:$0xff]  ;;  %s2485_s2 = sshll.u32 %s2934_s20, 4  ;;  %s2486_s2 = int_to_ptr.vmem [resolvable:$true] %s2485_s2 }
 0x15c   :  { %2572 = vmatprep.subr.bf16.mxu1 %v2571_v49  ;;  %1988 = vperm.xlu1 %2672, %v1950_v17   ;;  %s2901_s21 = scalar_lea.vmem %s2486_s2, 128  ;;  %p2906_p1 = scmp.lt.s32.totalorder %s2486_s2, %s2486_s2 }
 0x15d   :  { %p2902_p0 = scmp.ne.s32.totalorder %s2486_s2, %s2901_s21  ;;  %p2907_p2 = scmp.lt.s32.totalorder %s2901_s21, %s2901_s21 }
 0x15e   :  { %2530 = vmatmul.mubr.msk.f32.vlgmr.msra.gmra.mrb[0].mxu1 %vm988_vm3, %v568_v37 }
 0x15f   :  { %2574 = vmatpush1.bf16.msra.mxu1 %v2573_v60  ;;  %1071 = vmatprep.mubr.f32.mxu1 %v2925_v2  ;;  %p2908_p3 = por %p2907_p2, %p2906_p1 }
 0x160   :  { %2262 = vperm.xlu0 %2671, %v2258_v31   ;;  %2267 = vperm.xlu1 %2672, %v2259_v51  }
 0x161   :  { %p2909_p4 = pnand %p2908_p3, %p2902_p0 }
 0x162   :  { %2531 = vmatmul.mubr.msk.f32.gmra.mrb[2].mxu1 %vm988_vm3, %v569_v54 }
 0x163   :  { %1077 = vmatprep.mubr.f32.mxu1 %v2925_v2 }
 0x164   :  { %2389 = vperm.xlu0 %2671, %v2386_v56  }
 0x166   :  { %2532 = vmatmul.mubr.msk.f32.gmra.mrb[4].mxu1 %vm988_vm3, %v570_v55 }
 0x167   :  { %1083 = vmatprep.mubr.f32.mxu1 %v2925_v2 }
 0x16a   :  { %2533 = vmatmul.mubr.msk.f32.gmra.mrb[6].mxu1 %vm988_vm3, %v571_v50 }
 0x16b   :  { %1166 = vmatprep.mubr.f32.mxu1 %v2925_v2 }
 0x16e   :  { %2534 = vmatmul.mubr.msk.f32.vlgmr.msra.gmra.mrb[0].mxu1 %vm988_vm3, %v152_v57 }
 0x16f   :  { %1172 = vmatprep.mubr.f32.mxu1 %v2925_v2 }
 0x172   :  { %2535 = vmatmul.mubr.msk.f32.gmra.mrb[2].mxu1 %vm988_vm3, %v153_v33 }
 0x173   :  { %1178 = vmatprep.mubr.f32.mxu1 %v2925_v2 }
 0x176   :  { %2536 = vmatmul.mubr.msk.f32.gmra.mrb[4].mxu1 %vm988_vm3, %v154_v21 }
 0x177   :  { %1184 = vmatprep.mubr.f32.mxu1 %v2925_v2 }
 0x17a   :  { %2537 = vmatmul.mubr.msk.f32.gmra.mrb[6].mxu1 %vm988_vm3, %v155_v53 }
 0x17b   :  { %1758 = vmatprep.mubr.f32.mxu1 %v2925_v2 }
 0x1a6   :  { %v1198_v60 = vpop.permute.xlu0 %1197  ;;  %v1208_v7 = vpop.permute.xlu1 %1207 }
 0x1aa   :  { %v1203_v1 = vpop.permute.xlu0 %1202  ;;  %v1213_v16 = vpop.permute.xlu1 %1212 }
 0x241   :  { %v1168_v5 = vpop.f32.mrb[0].mxu1 }
 0x242   :  { %v1170_v15 = vpop.f32.mrb[1].mxu1  ;;  %v1215_v10 = vadd.f32 %v1198_v60, %v1168_v5 }
 0x243   :  { %v1216_v11 = vadd.f32 %v1198_v60, %v1170_v15 }
 0x245   :  { %v1174_v3 = vpop.f32.mrb[2].mxu1 }
 0x246   :  { %v1217_v38 = vadd.f32 %v1203_v1, %v1174_v3  ;;  %v1176_v9 = vpop.f32.mrb[3].mxu1 }
 0x247   :  { %v1218_v12 = vadd.f32 %v1203_v1, %v1176_v9 }
 0x248   :  { %v1223_v62 = vadd.f32 %v1217_v38, %v1215_v10 }
 0x249   :  { %v1232_v13 = vadd.f32 %v1218_v12, %v1216_v11  ;;  %v1180_v28 = vpop.f32.mrb[4].mxu1 }
 0x24a   :  { %v1219_v0 = vadd.f32 %v1208_v7, %v1180_v28  ;;  %v1182_v63 = vpop.f32.mrb[5].mxu1 }
 0x24b   :  { %v1220_v59 = vadd.f32 %v1208_v7, %v1182_v63 }
 0x24c   :  { %v1224_v20 = vadd.f32 %v1223_v62, %v1219_v0 }
 0x24d   :  { %v1233_v14 = vadd.f32 %v1232_v13, %v1220_v59  ;;  %v1186_v6 = vpop.f32.mrb[6].mxu1 }
 0x24e   :  { %v1221_v18 = vadd.f32 %v1213_v16, %v1186_v6  ;;  %v1188_v19 = vpop.f32.mrb[7].mxu1 }
 0x24f   :  { %v1222_v22 = vadd.f32 %v1213_v16, %v1188_v19 }
 0x250   :  { %v1225_v25 = vadd.f32 %v1224_v20, %v1221_v18 }
 0x251   :  { %v1234_v35 = vadd.f32 %v1233_v14, %v1222_v22 }
 0x252   :  { %v1226_v58 = vrot.slane %v1225_v25, 4 }
 0x253   :  { %v1235_v23 = vrot.slane %v1234_v35, 4 }
 0x254   :  { %v1227_v26 = vadd.f32 %v1226_v58, %v1225_v25 }
 0x255   :  { %v1236_v43 = vadd.f32 %v1235_v23, %v1234_v35 }
 0x256   :  { %v1228_v27 = vrot.slane %v1227_v26, 2 }
 0x257   :  { %v1237_v32 = vrot.slane %v1236_v43, 2 }
 0x258   :  { %v1229_v39 = vadd.f32 %v1228_v27, %v1227_v26  ;;  %v1292_v27 = vld [vmem:[%s3837_s5 + $0x8] sm:$0xff] }
 0x259   :  { %v1238_v24 = vadd.f32 %v1237_v32, %v1236_v43  ;;  %v1291_v43 = vld [vmem:[%s3837_s5] sm:$0xff]  ;;  %v1293_v32 = vld [vmem:[%s3837_s5 + $0x10] sm:$0xff] }
 0x25a   :  { %v1230_v61 = vrot.slane %v1229_v39, 1 }
 0x25b   :  { %v1239_v41 = vrot.slane %v1238_v24, 1 }
 0x25c   :  { %v1231_v29 = vadd.f32 %v1230_v61, %v1229_v39  ;;  %v1294_v39 = vld [vmem:[%s3837_s5 + $0x18] sm:$0xff]  ;;  %v1296_v61 = vld [vmem:[%s3837_s5 + $0x28] sm:$0xff] }
 0x25d   :  { %v1240_v34 = vadd.f32 %v1239_v41, %v1238_v24  ;;  %v1295_v24 = vld [vmem:[%s3837_s5 + $0x20] sm:$0xff]  ;;  %v1297_v41 = vld [vmem:[%s3837_s5 + $0x30] sm:$0xff] }
 0x25e   :  { %v1241_v36 = vmul.f32 0.03125, %v1231_v29  ;;  %v1298_v29 = vld [vmem:[%s3837_s5 + $0x38] sm:$0xff] }
 0x25f   :  { %v1242_v40 = vmul.f32 0.03125, %v1240_v34  ;;  %v1310_v34 = vpop.permute.xlu0 %1309 }
 0x260   :  { %v1243_v42 = vsub.f32 %v1215_v10, %v1241_v36  ;;  %v1245_v44 = vsub.f32 %v1217_v38, %v1241_v36  ;;  %v1247_v30 = vsub.f32 %v1219_v0, %v1241_v36  ;;  %v1249_v46 = vsub.f32 %v1221_v18, %v1241_v36 }
 0x261   :  { %v1244_v45 = vsub.f32 %v1216_v11, %v1242_v40  ;;  %v1246_v52 = vsub.f32 %v1218_v12, %v1242_v40  ;;  %v1248_v47 = vsub.f32 %v1220_v59, %v1242_v40  ;;  %v1250_v4 = vsub.f32 %v1222_v22, %v1242_v40 }
 0x262   :  { %v1251_v48 = vmul.f32 %v1243_v42, %v1243_v42  ;;  %v1253_v49 = vmul.f32 %v1245_v44, %v1245_v44  ;;  %v1255_v37 = vmul.f32 %v1247_v30, %v1247_v30  ;;  %v1257_v56 = vmul.f32 %v1249_v46, %v1249_v46 }
 0x263   :  { %v1252_v8 = vmul.f32 %v1244_v45, %v1244_v45  ;;  %v1254_v17 = vmul.f32 %v1246_v52, %v1246_v52  ;;  %v1256_v51 = vmul.f32 %v1248_v47, %v1248_v47  ;;  %v1258_v50 = vmul.f32 %v1250_v4, %v1250_v4 }
 0x264   :  { %v1259_v31 = vadd.f32 %v1253_v49, %v1251_v48 }
 0x265   :  { %v1268_v54 = vadd.f32 %v1254_v17, %v1252_v8 }
 0x266   :  { %v1260_v55 = vadd.f32 %v1259_v31, %v1255_v37  ;;  %v1320_v31 = vpop.permute.xlu0 %1319 }
 0x267   :  { %v1269_v57 = vadd.f32 %v1268_v54, %v1256_v51 }
 0x268   :  { %v1261_v33 = vadd.f32 %v1260_v55, %v1257_v56 }
 0x269   :  { %v1270_v21 = vadd.f32 %v1269_v57, %v1258_v50 }
 0x26a   :  { %v1262_v53 = vrot.slane %v1261_v33, 4 }
 0x26b   :  { %v1271_v60 = vrot.slane %v1270_v21, 4 }
 0x26c   :  { %v1263_v5 = vadd.f32 %v1262_v53, %v1261_v33 }
 0x26d   :  { %v1272_v15 = vadd.f32 %v1271_v60, %v1270_v21 }
 0x26e   :  { %v1264_v1 = vrot.slane %v1263_v5, 2 }
 0x26f   :  { %v1273_v3 = vrot.slane %v1272_v15, 2 }
 0x270   :  { %v1265_v10 = vadd.f32 %v1264_v1, %v1263_v5 }
 0x271   :  { %v1274_v38 = vadd.f32 %v1273_v3, %v1272_v15 }
 0x272   :  { %v1266_v9 = vrot.slane %v1265_v10, 1 }
 0x273   :  { %v1275_v7 = vrot.slane %v1274_v38, 1 }
 0x274   :  { %v1267_v11 = vadd.f32 %v1266_v9, %v1265_v10 }
 0x275   :  { %v1276_v12 = vadd.f32 %v1275_v7, %v1274_v38 }
 0x276   :  { %v1277_v62 = vmul.f32 0.03125, %v1267_v11 }
 0x277   :  { %v1278_v13 = vmul.f32 0.03125, %v1276_v12  ;;  %v1330_v12 = vpop.permute.xlu0 %1329 }
 0x278   :  { %v1279_v28 = vadd.f32 1e-05, %v1277_v62 }
 0x279   :  { %v1280_v0 = vadd.f32 1e-05, %v1278_v13 }
 0x27a   :  { %2689 = vrsqrt.f32 %v1279_v28 }
 0x27b   :  { %2691 = vrsqrt.f32 %v1280_v0 }
 0x284   :  { %v2690_v63 = vpop.eup %2689 }
 0x285   :  { %v2692_v59 = vpop.eup %2691  ;;  %v1287_v20 = vmul.f32 %v2690_v63, %v1247_v30  ;;  %v1289_v16 = vmul.f32 %v2690_v63, %v1249_v46  ;;  %v1283_v14 = vmul.f32 %v2690_v63, %v1243_v42  ;;  %v1285_v6 = vmul.f32 %v2690_v63, %v1245_v44 }
 0x286   :  { %v1290_v18 = vmul.f32 %v2692_v59, %v1250_v4  ;;  %v1284_v19 = vmul.f32 %v2692_v59, %v1244_v45  ;;  %v1286_v22 = vmul.f32 %v2692_v59, %v1246_v52  ;;  %v1288_v25 = vmul.f32 %v2692_v59, %v1248_v47  ;;  %v1315_v45 = vpop.permute.xlu1 %1314 }
 0x287   :  { %v2581_v35 = vpack.c.bf16 %v1289_v16, %v1287_v20  ;;  %v2577_v58 = vpack.c.bf16 %v1285_v6, %v1283_v14 }
 0x288   :  { %v2575_v23 = vpack.c.bf16 %v1286_v22, %v1284_v19  ;;  %v2579_v26 = vpack.c.bf16 %v1290_v18, %v1288_v25 }
 0x28a   :  { %2576 = vmatprep.subr.bf16.mxu0 %v2575_v23  ;;  %v1325_v53 = vpop.permute.xlu1 %1324 }
 0x28b   :  { %2578 = vmatpush1.bf16.msra.mxu0 %v2577_v58 }
 0x28c   :  { %2580 = vmatprep.subr.bf16.mxu0 %v2579_v26 }
 0x28f   :  { %2582 = vmatpush1.bf16.msra.mxu0 %v2581_v35 }
 0x292   :  { %2538 = vmatmul.mubr.msk.f32.vlgmr.msra.gmra.mrb[4].mxu0 %vm1347_vm4, %v1291_v43 }
 0x293   :  { %1442 = vmatprep.mubr.f32.mxu0 %v2925_v2 }
 0x296   :  { %2539 = vmatmul.mubr.msk.f32.gmra.mrb[6].mxu0 %vm1347_vm4, %v1292_v27  ;;  %v1335_v27 = vpop.permute.xlu1 %1334 }
 0x297   :  { %1448 = vmatprep.mubr.f32.mxu0 %v2925_v2 }
 0x29a   :  { %2540 = vmatmul.mubr.msk.f32.gmra.mrb[8].mxu0 %vm1347_vm4, %v1293_v32 }
 0x29b   :  { %1454 = vmatprep.mubr.f32.mxu0 %v2925_v2 }
 0x29e   :  { %2541 = vmatmul.mubr.msk.f32.gmra.mrb[10].mxu0 %vm1347_vm4, %v1294_v39 }
 0x29f   :  { %1460 = vmatprep.mubr.f32.mxu0 %v2925_v2 }
 0x2a2   :  { %2542 = vmatmul.mubr.msk.f32.gmra.mrb[12].mxu0 %vm1347_vm4, %v1295_v24 }
 0x2a3   :  { %1466 = vmatprep.mubr.f32.mxu0 %v2925_v2 }
 0x2a6   :  { %2543 = vmatmul.mubr.msk.f32.gmra.mrb[14].mxu0 %vm1347_vm4, %v1296_v61 }
 0x2a7   :  { %1472 = vmatprep.mubr.f32.mxu0 %v2925_v2 }
 0x2aa   :  { %2544 = vmatmul.mubr.msk.f32.gmra.mrb[16].mxu0 %vm1347_vm4, %v1297_v41 }
 0x2ab   :  { %1478 = vmatprep.mubr.f32.mxu0 %v2925_v2 }
 0x2ae   :  { %2545 = vmatmul.mubr.msk.f32.gmra.mrb[18].mxu0 %vm1347_vm4, %v1298_v29 }
 0x2af   :  { %2079 = vmatprep.mubr.f32.mxu0 %v2925_v2 }
 0x365   :  { %v1438_v36 = vpop.f32.mrb[4].mxu0 }
 0x366   :  { %v1439_v40 = vadd.f32 %v1438_v36, %v1310_v34  ;;  %v1440_v42 = vpop.f32.mrb[5].mxu0 }
 0x367   :  { %v1441_v44 = vadd.f32 %v1440_v42, %v1310_v34 }
 0x368   :  { %v1485_v30 = vmul.f32 30.0, %v1439_v40  ;;  %v1533_v46 = vmul.f32 0.5, %v1439_v40 }
 0x369   :  { %v1486_v52 = vmul.f32 30.0, %v1441_v44  ;;  %v1534_v47 = vmul.f32 0.5, %v1441_v44  ;;  %v1444_v4 = vpop.f32.mrb[6].mxu0 }
 0x36a   :  { %2693 = vtanh.f32 %v1485_v30  ;;  %v3482_v48 = vadd.f32 %v1444_v4, %v1315_v45  ;;  %v1446_v49 = vpop.f32.mrb[7].mxu0 }
 0x36b   :  { %2695 = vtanh.f32 %v1533_v46  ;;  %v3484_v8 = vadd.f32 %v1446_v49, %v1315_v45  ;;  %v1340_v49 = vpop.permute.xlu0 %1339 }
 0x36c   :  { %2697 = vtanh.f32 %v1486_v52  ;;  %v1487_v17 = vmul.f32 30.0, %v3482_v48  ;;  %v1535_v37 = vmul.f32 0.5, %v3482_v48 }
 0x36d   :  { %2699 = vtanh.f32 %v1534_v47  ;;  %v1488_v51 = vmul.f32 30.0, %v3484_v8  ;;  %v1536_v54 = vmul.f32 0.5, %v3484_v8  ;;  %v1450_v56 = vpop.f32.mrb[8].mxu0 }
 0x36e   :  { %2701 = vtanh.f32 %v1487_v17  ;;  %v3490_v55 = vadd.f32 %v1450_v56, %v1320_v31  ;;  %v1452_v50 = vpop.f32.mrb[9].mxu0 }
 0x36f   :  { %2703 = vtanh.f32 %v1535_v37  ;;  %v3492_v57 = vadd.f32 %v1452_v50, %v1320_v31 }
 0x370   :  { %2705 = vtanh.f32 %v1488_v51  ;;  %v1489_v33 = vmul.f32 30.0, %v3490_v55  ;;  %v1537_v21 = vmul.f32 0.5, %v3490_v55 }
 0x371   :  { %2707 = vtanh.f32 %v1536_v54  ;;  %v1490_v60 = vmul.f32 30.0, %v3492_v57  ;;  %v1538_v5 = vmul.f32 0.5, %v3492_v57  ;;  %v1456_v15 = vpop.f32.mrb[10].mxu0 }
 0x372   :  { %2709 = vtanh.f32 %v1489_v33  ;;  %v3498_v1 = vadd.f32 %v1456_v15, %v1325_v53  ;;  %v1458_v3 = vpop.f32.mrb[11].mxu0 }
 0x373   :  { %2711 = vtanh.f32 %v1537_v21  ;;  %v3500_v10 = vadd.f32 %v1458_v3, %v1325_v53 }
 0x374   :  { %v2694_v38 = vpop.eup %2693  ;;  %2713 = vtanh.f32 %v1490_v60  ;;  %v1491_v9 = vmul.f32 30.0, %v3498_v1  ;;  %v1539_v7 = vmul.f32 0.5, %v3498_v1 }
 0x375   :  { %v2696_v11 = vpop.eup %2695  ;;  %2715 = vtanh.f32 %v1538_v5  ;;  %v1540_v62 = vmul.f32 0.5, %v3500_v10  ;;  %v1462_v13 = vpop.f32.mrb[12].mxu0  ;;  %v1492_v63 = vmul.f32 30.0, %v3500_v10  ;;  %v1517_v18 = vadd.f32 %v2694_v38, %v1439_v40 }
 0x376   :  { %v2698_v28 = vpop.eup %2697  ;;  %v1565_v0 = vadd.f32 1.0, %v2696_v11  ;;  %2717 = vtanh.f32 %v1491_v9  ;;  %v3506_v59 = vadd.f32 %v1462_v13, %v1330_v12  ;;  %v1464_v20 = vpop.f32.mrb[13].mxu0 }
 0x377   :  { %v2700_v16 = vpop.eup %2699  ;;  %2719 = vtanh.f32 %v1539_v7  ;;  %v3508_v14 = vadd.f32 %v1464_v20, %v1330_v12  ;;  %v3511_v35 = vadd.f32 %v2698_v28, %v1441_v44  ;;  %v1345_v7 = vpop.permute.xlu1 %1344 }
 0x378   :  { %v2702_v6 = vpop.eup %2701  ;;  %v1581_v19 = vmul.f32 0.5, %v1565_v0  ;;  %v1493_v22 = vmul.f32 30.0, %v3506_v59  ;;  %v1566_v58 = vadd.f32 1.0, %v2700_v16  ;;  %2721 = vtanh.f32 %v1540_v62 }
 0x379   :  { %v2704_v25 = vpop.eup %2703  ;;  %v1541_v23 = vmul.f32 0.5, %v3506_v59  ;;  %v1468_v26 = vpop.f32.mrb[14].mxu0  ;;  %2723 = vtanh.f32 %v1492_v63  ;;  %v1494_v39 = vmul.f32 30.0, %v3508_v14  ;;  %v1542_v24 = vmul.f32 0.5, %v3508_v14 }
 0x37a   :  { %v2706_v43 = vpop.eup %2705  ;;  %v1567_v32 = vadd.f32 1.0, %v2704_v25  ;;  %v1470_v61 = vpop.f32.mrb[15].mxu0  ;;  %v1519_v29 = vadd.f32 %v2702_v6, %v3482_v48  ;;  %v3517_v34 = vadd.f32 %v1468_v26, %v1335_v27  ;;  %v3521_v42 = vmul.f32 %v1581_v19, %v1517_v18 }
 0x37b   :  { %v2708_v41 = vpop.eup %2707  ;;  %2725 = vtanh.f32 %v1541_v23  ;;  %v3519_v36 = vadd.f32 %v1470_v61, %v1335_v27  ;;  %v3524_v30 = vadd.f32 %v2706_v43, %v3484_v8  ;;  %v1582_v50 = vmul.f32 0.5, %v1566_v58 }
 0x37c   :  { %v2710_v40 = vpop.eup %2709  ;;  %v1583_v44 = vmul.f32 0.5, %v1567_v32  ;;  %2727 = vtanh.f32 %v1493_v22  ;;  %v1568_v45 = vadd.f32 1.0, %v2708_v41  ;;  %v1495_v52 = vmul.f32 30.0, %v3517_v34 }
 0x37d   :  { %v2712_v46 = vpop.eup %2711  ;;  %2729 = vtanh.f32 %v1542_v24  ;;  %v1543_v47 = vmul.f32 0.5, %v3517_v34  ;;  %v1474_v4 = vpop.f32.mrb[16].mxu0  ;;  %v1496_v37 = vmul.f32 30.0, %v3519_v36  ;;  %v1544_v31 = vmul.f32 0.5, %v3519_v36 }
 0x37e   :  { %v2714_v48 = vpop.eup %2713  ;;  %v1569_v17 = vadd.f32 1.0, %v2712_v46  ;;  %2731 = vtanh.f32 %v1494_v39  ;;  %v1476_v51 = vpop.f32.mrb[17].mxu0  ;;  %v3530_v54 = vadd.f32 %v1474_v4, %v1340_v49  ;;  %v3534_v21 = vmul.f32 %v1583_v44, %v1519_v29 }
 0x37f   :  { %v2716_v8 = vpop.eup %2715  ;;  %2733 = vtanh.f32 %v1495_v52  ;;  %v3532_v56 = vadd.f32 %v1476_v51, %v1340_v49  ;;  %v1521_v53 = vadd.f32 %v2710_v40, %v3490_v55  ;;  %v1522_v60 = vadd.f32 %v2714_v48, %v3492_v57 }
 0x380   :  { %v2718_v33 = vpop.eup %2717  ;;  %2735 = vtanh.f32 %v1543_v47  ;;  %v1585_v15 = vmul.f32 0.5, %v1569_v17  ;;  %v1497_v3 = vmul.f32 30.0, %v3530_v54  ;;  %v1545_v38 = vmul.f32 0.5, %v3530_v54 }
 0x381   :  { %v2720_v5 = vpop.eup %2719  ;;  %2737 = vtanh.f32 %v1496_v37  ;;  %v1480_v9 = vpop.f32.mrb[18].mxu0  ;;  %v1570_v11 = vadd.f32 1.0, %v2716_v8  ;;  %v1498_v62 = vmul.f32 30.0, %v3532_v56  ;;  %v1546_v55 = vmul.f32 0.5, %v3532_v56 }
 0x382   :  { %v1571_v12 = vadd.f32 1.0, %v2720_v5  ;;  %2739 = vtanh.f32 %v1544_v31  ;;  %v1482_v13 = vpop.f32.mrb[19].mxu0  ;;  %v2722_v28 = vpop.eup %2721  ;;  %v3542_v57 = vadd.f32 %v1480_v9, %v1345_v7  ;;  %v1584_v0 = vmul.f32 0.5, %v1568_v45 }
 0x383   :  { %2741 = vtanh.f32 %v1497_v3  ;;  %v2724_v63 = vpop.eup %2723  ;;  %v1523_v20 = vadd.f32 %v2718_v33, %v3498_v1  ;;  %v3545_v6 = vadd.f32 %v1482_v13, %v1345_v7  ;;  %v1572_v19 = vadd.f32 1.0, %v2722_v28 }
 0x384   :  { %v1587_v16 = vmul.f32 0.5, %v1571_v12  ;;  %2743 = vtanh.f32 %v1545_v38  ;;  %v1499_v22 = vmul.f32 30.0, %v3542_v57  ;;  %v1547_v25 = vmul.f32 0.5, %v3542_v57 }
 0x385   :  { %v2726_v18 = vpop.eup %2725  ;;  %2745 = vtanh.f32 %v1498_v62  ;;  %v1601_v23 = vmul.f32 %v1585_v15, %v1521_v53  ;;  %v1500_v43 = vmul.f32 30.0, %v3545_v6  ;;  %v1524_v1 = vadd.f32 %v2724_v63, %v3500_v10 }
 0x386   :  { %v2728_v58 = vpop.eup %2727  ;;  %v1573_v26 = vadd.f32 1.0, %v2726_v18  ;;  %2747 = vtanh.f32 %v1546_v55  ;;  %v1603_v32 = vmul.f32 %v1587_v16, %v1523_v20  ;;  %v1548_v39 = vmul.f32 0.5, %v3545_v6 }
 0x387   :  { %v2730_v27 = vpop.eup %2729  ;;  %2749 = vtanh.f32 %v1499_v22  ;;  %v1598_v41 = vmul.f32 %v1582_v50, %v3511_v35  ;;  %v1600_v29 = vmul.f32 %v1584_v0, %v3524_v30  ;;  %v2585_v44 = vpack.c.bf16 %v3534_v21, %v3521_v42 }
 0x388   :  { %v2732_v24 = vpop.eup %2731  ;;  %v1574_v61 = vadd.f32 1.0, %v2730_v27  ;;  %2751 = vtanh.f32 %v1547_v25  ;;  %v1586_v46 = vmul.f32 0.5, %v1570_v11  ;;  %v1588_v45 = vmul.f32 0.5, %v1572_v19 }
 0x389   :  { %v2734_v40 = vpop.eup %2733  ;;  %2753 = vtanh.f32 %v1500_v43  ;;  %v1589_v47 = vmul.f32 0.5, %v1573_v26  ;;  %v2583_v10 = vpack.c.bf16 %v1600_v29, %v1598_v41  ;;  %v2589_v37 = vpack.c.bf16 %v1603_v32, %v1601_v23  ;;  %v1620_v41 = vld [vmem:[%s3839_s7 + $0x38] sm:$0xff]  ;;  %v1632_v29 = vpop.permute.xlu0 %1631 }
 0x38a   :  { %v2736_v52 = vpop.eup %2735  ;;  %2755 = vtanh.f32 %v1548_v39  ;;  %v1602_v49 = vmul.f32 %v1586_v46, %v1522_v60  ;;  %v1604_v17 = vmul.f32 %v1588_v45, %v1524_v1  ;;  %v1525_v35 = vadd.f32 %v2728_v58, %v3506_v59  ;;  %v1617_v39 = vld [vmem:[%s3839_s7 + $0x20] sm:$0xff] }
 0x38b   :  { %v2738_v4 = vpop.eup %2737  ;;  %v1575_v48 = vadd.f32 1.0, %v2736_v52  ;;  %v1527_v30 = vadd.f32 %v2734_v40, %v3517_v34  ;;  %2584 = vmatprep.subr.bf16.mxu1 %v2583_v10  ;;  %v1590_v33 = vmul.f32 0.5, %v1574_v61  ;;  %v1526_v5 = vadd.f32 %v2732_v24, %v3508_v14  ;;  %v1618_v24 = vld [vmem:[%s3839_s7 + $0x28] sm:$0xff]  ;;  %v1619_v61 = vld [vmem:[%s3839_s7 + $0x30] sm:$0xff]  ;;  %v1637_v10 = vpop.permute.xlu1 %1636 }
 0x38c   :  { %v2740_v31 = vpop.eup %2739  ;;  %2586 = vmatpush1.bf16.msra.mxu1 %v2585_v44  ;;  %v2587_v50 = vpack.c.bf16 %v1604_v17, %v1602_v49  ;;  %v1605_v53 = vmul.f32 %v1589_v47, %v1525_v35  ;;  %v1528_v3 = vadd.f32 %v2738_v4, %v3519_v36 }
 0x38d   :  { %v2742_v51 = vpop.eup %2741  ;;  %v1591_v8 = vmul.f32 0.5, %v1575_v48  ;;  %v1576_v42 = vadd.f32 1.0, %v2740_v31  ;;  %v1606_v11 = vmul.f32 %v1590_v33, %v1526_v5 }
 0x38e   :  { %v2744_v21 = vpop.eup %2743  ;;  %2588 = vmatprep.subr.bf16.mxu1 %v2587_v50  ;;  %v1529_v20 = vadd.f32 %v2742_v51, %v3530_v54  ;;  %v1613_v54 = vld [vmem:[%s3839_s7] sm:$0xff]  ;;  %v1642_v51 = vpop.permute.xlu0 %1641 }
 0x38f   :  { %v2746_v15 = vpop.eup %2745  ;;  %v1607_v60 = vmul.f32 %v1591_v8, %v1527_v30  ;;  %v1577_v38 = vadd.f32 1.0, %v2744_v21  ;;  %v1592_v59 = vmul.f32 0.5, %v1576_v42 }
 0x390   :  { %v2748_v9 = vpop.eup %2747  ;;  %2590 = vmatpush1.bf16.msra.mxu1 %v2589_v37  ;;  %v1530_v22 = vadd.f32 %v2746_v15, %v3532_v56  ;;  %v1614_v56 = vld [vmem:[%s3839_s7 + $0x8] sm:$0xff] }
 0x391   :  { %v2750_v34 = vpop.eup %2749  ;;  %v1578_v7 = vadd.f32 1.0, %v2748_v9  ;;  %v1608_v12 = vmul.f32 %v1592_v59, %v1528_v3  ;;  %v2593_v62 = vpack.c.bf16 %v1607_v60, %v1605_v53  ;;  %v1593_v55 = vmul.f32 0.5, %v1577_v38  ;;  %v1647_v60 = vpop.permute.xlu1 %1646 }
 0x392   :  { %v2752_v13 = vpop.eup %2751  ;;  %v1531_v36 = vadd.f32 %v2750_v34, %v3542_v57  ;;  %v1615_v57 = vld [vmem:[%s3839_s7 + $0x10] sm:$0xff] }
 0x393   :  { %v2754_v28 = vpop.eup %2753  ;;  %v1579_v0 = vadd.f32 1.0, %v2752_v13  ;;  %v2591_v63 = vpack.c.bf16 %v1608_v12, %v1606_v11  ;;  %v1594_v19 = vmul.f32 0.5, %v1578_v7  ;;  %v1609_v25 = vmul.f32 %v1593_v55, %v1529_v20 }
 0x394   :  { %v2756_v14 = vpop.eup %2755  ;;  %v1532_v23 = vadd.f32 %v2754_v28, %v3545_v6  ;;  %v1616_v6 = vld [vmem:[%s3839_s7 + $0x18] sm:$0xff]  ;;  %v1652_v28 = vpop.permute.xlu0 %1651 }
 0x395   :  { %v1595_v16 = vmul.f32 0.5, %v1579_v0  ;;  %v1580_v18 = vadd.f32 1.0, %v2756_v14  ;;  %2592 = vmatprep.subr.bf16.mxu1 %v2591_v63  ;;  %v1610_v43 = vmul.f32 %v1594_v19, %v1530_v22 }
 0x396   :  { %2594 = vmatpush1.bf16.msra.mxu1 %v2593_v62 }
 0x397   :  { %v1611_v58 = vmul.f32 %v1595_v16, %v1531_v36  ;;  %v1596_v26 = vmul.f32 0.5, %v1580_v18 }
 0x399   :  { %v1612_v27 = vmul.f32 %v1596_v26, %v1532_v23  ;;  %v2597_v32 = vpack.c.bf16 %v1611_v58, %v1609_v25 }
 0x39b   :  { %v2595_v1 = vpack.c.bf16 %v1612_v27, %v1610_v43 }
 0x39d   :  { %2596 = vmatprep.subr.bf16.mxu1 %v2595_v1 }
 0x39e   :  { %2598 = vmatpush1.bf16.msra.mxu1 %v2597_v32 }
 0x3a1   :  { %2546 = vmatmul.mubr.msk.f32.vlgmr.msra.gmra.mrb[8].mxu1 %vm1669_vm2, %v1613_v54 }
 0x3a2   :  { %1764 = vmatprep.mubr.f32.mxu1 %v2925_v2 }
 0x3a5   :  { %2547 = vmatmul.mubr.msk.f32.gmra.mrb[10].mxu1 %vm1669_vm2, %v1614_v56  ;;  %v1657_v56 = vpop.permute.xlu1 %1656 }
 0x3a6   :  { %1770 = vmatprep.mubr.f32.mxu1 %v2925_v2 }
 0x3a9   :  { %2548 = vmatmul.mubr.msk.f32.gmra.mrb[12].mxu1 %vm1669_vm2, %v1615_v57 }
 0x3aa   :  { %1776 = vmatprep.mubr.f32.mxu1 %v2925_v2 }
 0x3ad   :  { %2549 = vmatmul.mubr.msk.f32.gmra.mrb[14].mxu1 %vm1669_vm2, %v1616_v6 }
 0x3ae   :  { %1782 = vmatprep.mubr.f32.mxu1 %v2925_v2 }
 0x3b1   :  { %2550 = vmatmul.mubr.msk.f32.gmra.mrb[16].mxu1 %vm1669_vm2, %v1617_v39 }
 0x3b2   :  { %1788 = vmatprep.mubr.f32.mxu1 %v2925_v2 }
 0x3b5   :  { %2551 = vmatmul.mubr.msk.f32.gmra.mrb[18].mxu1 %vm1669_vm2, %v1618_v24 }
 0x3b6   :  { %1794 = vmatprep.mubr.f32.mxu1 %v2925_v2 }
 0x3b9   :  { %2552 = vmatmul.mubr.msk.f32.gmra.mrb[20].mxu1 %vm1669_vm2, %v1619_v61 }
 0x3ba   :  { %1800 = vmatprep.mubr.f32.mxu1 %v2925_v2 }
 0x3bd   :  { %2553 = vmatmul.mubr.msk.f32.gmra.mrb[22].mxu1 %vm1669_vm2, %v1620_v41 }
 0x3be   :  { %2340 = vmatprep.mubr.f32.mxu1 %v2925_v2 }
 0x474   :  { %v1760_v40 = vpop.f32.mrb[8].mxu1 }
 0x475   :  { %v1761_v44 = vadd.f32 %v1760_v40, %v1632_v29  ;;  %v1762_v46 = vpop.f32.mrb[9].mxu1 }
 0x476   :  { %v1763_v45 = vadd.f32 %v1762_v46, %v1632_v29 }
 0x477   :  { %v1807_v52 = vmul.f32 30.0, %v1761_v44  ;;  %v1855_v47 = vmul.f32 0.5, %v1761_v44 }
 0x478   :  { %v1808_v4 = vmul.f32 30.0, %v1763_v45  ;;  %v1856_v48 = vmul.f32 0.5, %v1763_v45  ;;  %v1766_v49 = vpop.f32.mrb[10].mxu1 }
 0x479   :  { %2757 = vtanh.f32 %v1807_v52  ;;  %v3604_v17 = vadd.f32 %v1766_v49, %v1637_v10  ;;  %v1768_v37 = vpop.f32.mrb[11].mxu1 }
 0x47a   :  { %2759 = vtanh.f32 %v1855_v47  ;;  %v3606_v31 = vadd.f32 %v1768_v37, %v1637_v10  ;;  %v1662_v37 = vpop.permute.xlu0 %1661 }
 0x47b   :  { %2761 = vtanh.f32 %v1808_v4  ;;  %v1809_v35 = vmul.f32 30.0, %v3604_v17  ;;  %v1857_v30 = vmul.f32 0.5, %v3604_v17 }
 0x47c   :  { %2763 = vtanh.f32 %v1856_v48  ;;  %v1810_v8 = vmul.f32 30.0, %v3606_v31  ;;  %v1858_v42 = vmul.f32 0.5, %v3606_v31  ;;  %v1772_v50 = vpop.f32.mrb[12].mxu1 }
 0x47d   :  { %2765 = vtanh.f32 %v1809_v35  ;;  %v3612_v33 = vadd.f32 %v1772_v50, %v1642_v51  ;;  %v1774_v21 = vpop.f32.mrb[13].mxu1 }
 0x47e   :  { %2767 = vtanh.f32 %v1857_v30  ;;  %v3614_v53 = vadd.f32 %v1774_v21, %v1642_v51 }
 0x47f   :  { %2769 = vtanh.f32 %v1810_v8  ;;  %v1811_v5 = vmul.f32 30.0, %v3612_v33  ;;  %v1859_v15 = vmul.f32 0.5, %v3612_v33 }
 0x480   :  { %2771 = vtanh.f32 %v1858_v42  ;;  %v1812_v3 = vmul.f32 30.0, %v3614_v53  ;;  %v1860_v38 = vmul.f32 0.5, %v3614_v53  ;;  %v1778_v59 = vpop.f32.mrb[14].mxu1 }
 0x481   :  { %2773 = vtanh.f32 %v1811_v5  ;;  %v3620_v9 = vadd.f32 %v1778_v59, %v1647_v60  ;;  %v1780_v34 = vpop.f32.mrb[15].mxu1 }
 0x482   :  { %2775 = vtanh.f32 %v1859_v15  ;;  %v3622_v7 = vadd.f32 %v1780_v34, %v1647_v60 }
 0x483   :  { %v2758_v11 = vpop.eup %2757  ;;  %2777 = vtanh.f32 %v1812_v3  ;;  %v1813_v12 = vmul.f32 30.0, %v3620_v9  ;;  %v1861_v62 = vmul.f32 0.5, %v3620_v9 }
 0x484   :  { %v2760_v13 = vpop.eup %2759  ;;  %2779 = vtanh.f32 %v1860_v38  ;;  %v1862_v55 = vmul.f32 0.5, %v3622_v7  ;;  %v1784_v0 = vpop.f32.mrb[16].mxu1  ;;  %v1814_v20 = vmul.f32 30.0, %v3622_v7  ;;  %v1839_v25 = vadd.f32 %v2758_v11, %v1761_v44 }
 0x485   :  { %v2762_v63 = vpop.eup %2761  ;;  %v1887_v14 = vadd.f32 1.0, %v2760_v13  ;;  %2781 = vtanh.f32 %v1813_v12  ;;  %v3628_v36 = vadd.f32 %v1784_v0, %v1652_v28  ;;  %v1786_v16 = vpop.f32.mrb[17].mxu1 }
 0x486   :  { %v2764_v18 = vpop.eup %2763  ;;  %2783 = vtanh.f32 %v1861_v62  ;;  %v3630_v19 = vadd.f32 %v1786_v16, %v1652_v28  ;;  %v3633_v43 = vadd.f32 %v2762_v63, %v1763_v45  ;;  %v1667_v62 = vpop.permute.xlu1 %1666 }
 0x487   :  { %v2766_v22 = vpop.eup %2765  ;;  %v1903_v58 = vmul.f32 0.5, %v1887_v14  ;;  %v1815_v23 = vmul.f32 30.0, %v3628_v36  ;;  %v1888_v27 = vadd.f32 1.0, %v2764_v18  ;;  %2785 = vtanh.f32 %v1862_v55 }
 0x488   :  { %v2768_v26 = vpop.eup %2767  ;;  %v1863_v32 = vmul.f32 0.5, %v3628_v36  ;;  %v1790_v1 = vpop.f32.mrb[18].mxu1  ;;  %2787 = vtanh.f32 %v1814_v20  ;;  %v1816_v6 = vmul.f32 30.0, %v3630_v19  ;;  %v1864_v39 = vmul.f32 0.5, %v3630_v19 }
 0x489   :  { %v2770_v54 = vpop.eup %2769  ;;  %v1889_v57 = vadd.f32 1.0, %v2768_v26  ;;  %v1792_v24 = vpop.f32.mrb[19].mxu1  ;;  %v1841_v41 = vadd.f32 %v2766_v22, %v3604_v17  ;;  %v3639_v29 = vadd.f32 %v1790_v1, %v1657_v56  ;;  %v3643_v46 = vmul.f32 %v1903_v58, %v1839_v25 }
 0x48a   :  { %v2772_v61 = vpop.eup %2771  ;;  %2789 = vtanh.f32 %v1863_v32  ;;  %v3641_v40 = vadd.f32 %v1792_v24, %v1657_v56  ;;  %v3646_v52 = vadd.f32 %v2770_v54, %v3606_v31  ;;  %v1904_v21 = vmul.f32 0.5, %v1888_v27 }
 0x48b   :  { %v2774_v44 = vpop.eup %2773  ;;  %v1905_v45 = vmul.f32 0.5, %v1889_v57  ;;  %2791 = vtanh.f32 %v1815_v23  ;;  %v1890_v10 = vadd.f32 1.0, %v2772_v61  ;;  %v1817_v4 = vmul.f32 30.0, %v3639_v29 }
 0x48c   :  { %v2776_v47 = vpop.eup %2775  ;;  %2793 = vtanh.f32 %v1864_v39  ;;  %v1865_v48 = vmul.f32 0.5, %v3639_v29  ;;  %v1796_v49 = vpop.f32.mrb[20].mxu1  ;;  %v1818_v30 = vmul.f32 30.0, %v3641_v40  ;;  %v1866_v51 = vmul.f32 0.5, %v3641_v40 }
 0x48d   :  { %v2778_v17 = vpop.eup %2777  ;;  %v1891_v35 = vadd.f32 1.0, %v2776_v47  ;;  %2795 = vtanh.f32 %v1816_v6  ;;  %v1798_v8 = vpop.f32.mrb[21].mxu1  ;;  %v3652_v42 = vadd.f32 %v1796_v49, %v1662_v37  ;;  %v3656_v15 = vmul.f32 %v1905_v45, %v1841_v41 }
 0x48e   :  { %v2780_v31 = vpop.eup %2779  ;;  %2797 = vtanh.f32 %v1817_v4  ;;  %v3654_v50 = vadd.f32 %v1798_v8, %v1662_v37  ;;  %v1843_v60 = vadd.f32 %v2774_v44, %v3612_v33  ;;  %v1844_v3 = vadd.f32 %v2778_v17, %v3614_v53 }
 0x48f   :  { %v2782_v5 = vpop.eup %2781  ;;  %2799 = vtanh.f32 %v1865_v48  ;;  %v1907_v59 = vmul.f32 0.5, %v1891_v35  ;;  %v1819_v34 = vmul.f32 30.0, %v3652_v42  ;;  %v1867_v11 = vmul.f32 0.5, %v3652_v42 }
 0x490   :  { %v2784_v38 = vpop.eup %2783  ;;  %2801 = vtanh.f32 %v1818_v30  ;;  %v1802_v12 = vpop.f32.mrb[22].mxu1  ;;  %v1892_v13 = vadd.f32 1.0, %v2780_v31  ;;  %v1820_v55 = vmul.f32 30.0, %v3654_v50  ;;  %v1868_v33 = vmul.f32 0.5, %v3654_v50 }
 0x491   :  { %v1893_v28 = vadd.f32 1.0, %v2784_v38  ;;  %2803 = vtanh.f32 %v1866_v51  ;;  %v1804_v0 = vpop.f32.mrb[23].mxu1  ;;  %v2786_v63 = vpop.eup %2785  ;;  %v3664_v53 = vadd.f32 %v1802_v12, %v1667_v62  ;;  %v1906_v14 = vmul.f32 0.5, %v1890_v10 }
 0x492   :  { %2805 = vtanh.f32 %v1819_v34  ;;  %v2788_v20 = vpop.eup %2787  ;;  %v1845_v16 = vadd.f32 %v2782_v5, %v3620_v9  ;;  %v3667_v22 = vadd.f32 %v1804_v0, %v1667_v62  ;;  %v1894_v58 = vadd.f32 1.0, %v2786_v63 }
 0x493   :  { %v1909_v18 = vmul.f32 0.5, %v1893_v28  ;;  %2807 = vtanh.f32 %v1867_v11  ;;  %v1821_v23 = vmul.f32 30.0, %v3664_v53  ;;  %v1869_v26 = vmul.f32 0.5, %v3664_v53 }
 0x494   :  { %v2790_v25 = vpop.eup %2789  ;;  %2809 = vtanh.f32 %v1820_v55  ;;  %v1923_v32 = vmul.f32 %v1907_v59, %v1843_v60  ;;  %v1822_v54 = vmul.f32 30.0, %v3667_v22  ;;  %v1846_v9 = vadd.f32 %v2788_v20, %v3622_v7 }
 0x495   :  { %v2792_v27 = vpop.eup %2791  ;;  %v1895_v1 = vadd.f32 1.0, %v2790_v25  ;;  %2811 = vtanh.f32 %v1868_v33  ;;  %v1925_v57 = vmul.f32 %v1909_v18, %v1845_v16  ;;  %v1870_v6 = vmul.f32 0.5, %v3667_v22 }
 0x496   :  { %v2794_v56 = vpop.eup %2793  ;;  %2813 = vtanh.f32 %v1821_v23  ;;  %v1920_v61 = vmul.f32 %v1904_v21, %v3633_v43  ;;  %v1922_v41 = vmul.f32 %v1906_v14, %v3646_v52  ;;  %v2601_v45 = vpack.c.bf16 %v3656_v15, %v3643_v46 }
 0x497   :  { %v2796_v39 = vpop.eup %2795  ;;  %v1896_v24 = vadd.f32 1.0, %v2794_v56  ;;  %2815 = vtanh.f32 %v1869_v26  ;;  %v1908_v47 = vmul.f32 0.5, %v1892_v13  ;;  %v1910_v10 = vmul.f32 0.5, %v1894_v58 }
 0x498   :  { %v2798_v44 = vpop.eup %2797  ;;  %2817 = vtanh.f32 %v1822_v54  ;;  %v1911_v48 = vmul.f32 0.5, %v1895_v1  ;;  %v2599_v7 = vpack.c.bf16 %v1922_v41, %v1920_v61  ;;  %v2605_v30 = vpack.c.bf16 %v1925_v57, %v1923_v32  ;;  %v1942_v61 = vld [vmem:[%s3841_s9 + $0x38] sm:$0xff]  ;;  %v1954_v41 = vpop.permute.xlu0 %1953 }
 0x499   :  { %v2800_v4 = vpop.eup %2799  ;;  %2819 = vtanh.f32 %v1870_v6  ;;  %v1924_v37 = vmul.f32 %v1908_v47, %v1844_v3  ;;  %v1926_v35 = vmul.f32 %v1910_v10, %v1846_v9  ;;  %v1847_v43 = vadd.f32 %v2792_v27, %v3628_v36  ;;  %v1939_v6 = vld [vmem:[%s3841_s9 + $0x20] sm:$0xff] }
 0x49a   :  { %v2802_v49 = vpop.eup %2801  ;;  %v1897_v17 = vadd.f32 1.0, %v2800_v4  ;;  %v1849_v52 = vadd.f32 %v2798_v44, %v3639_v29  ;;  %2600 = vmatprep.subr.bf16.mxu0 %v2599_v7  ;;  %v1912_v5 = vmul.f32 0.5, %v1896_v24  ;;  %v1848_v38 = vadd.f32 %v2796_v39, %v3630_v19  ;;  %v1940_v39 = vld [vmem:[%s3841_s9 + $0x28] sm:$0xff]  ;;  %v1941_v24 = vld [vmem:[%s3841_s9 + $0x30] sm:$0xff]  ;;  %v1959_v7 = vpop.permute.xlu1 %1958 }
 0x49b   :  { %v2804_v51 = vpop.eup %2803  ;;  %2602 = vmatpush1.bf16.msra.mxu0 %v2601_v45  ;;  %v2603_v21 = vpack.c.bf16 %v1926_v35, %v1924_v37  ;;  %v1927_v60 = vmul.f32 %v1911_v48, %v1847_v43  ;;  %v1850_v34 = vadd.f32 %v2802_v49, %v3641_v40 }
 0x49c   :  { %v2806_v8 = vpop.eup %2805  ;;  %v1913_v31 = vmul.f32 0.5, %v1897_v17  ;;  %v1898_v46 = vadd.f32 1.0, %v2804_v51  ;;  %v1928_v13 = vmul.f32 %v1912_v5, %v1848_v38 }
 0x49d   :  { %v2808_v15 = vpop.eup %2807  ;;  %2604 = vmatprep.subr.bf16.mxu0 %v2603_v21  ;;  %v1851_v16 = vadd.f32 %v2806_v8, %v3652_v42  ;;  %v1935_v42 = vld [vmem:[%s3841_s9] sm:$0xff]  ;;  %v1964_v8 = vpop.permute.xlu0 %1963 }
 0x49e   :  { %v2810_v59 = vpop.eup %2809  ;;  %v1929_v3 = vmul.f32 %v1913_v31, %v1849_v52  ;;  %v1899_v11 = vadd.f32 1.0, %v2808_v15  ;;  %v1914_v36 = vmul.f32 0.5, %v1898_v46 }
 0x49f   :  { %v2812_v12 = vpop.eup %2811  ;;  %2606 = vmatpush1.bf16.msra.mxu0 %v2605_v30  ;;  %v1852_v23 = vadd.f32 %v2810_v59, %v3654_v50  ;;  %v1936_v50 = vld [vmem:[%s3841_s9 + $0x8] sm:$0xff] }
 0x4a0   :  { %v2814_v29 = vpop.eup %2813  ;;  %v1900_v62 = vadd.f32 1.0, %v2812_v12  ;;  %v1930_v28 = vmul.f32 %v1914_v36, %v1850_v34  ;;  %v2609_v55 = vpack.c.bf16 %v1929_v3, %v1927_v60  ;;  %v1915_v33 = vmul.f32 0.5, %v1899_v11  ;;  %v1969_v3 = vpop.permute.xlu1 %1968 }
 0x4a1   :  { %v2816_v0 = vpop.eup %2815  ;;  %v1853_v40 = vadd.f32 %v2814_v29, %v3664_v53  ;;  %v1937_v53 = vld [vmem:[%s3841_s9 + $0x10] sm:$0xff] }
 0x4a2   :  { %v2818_v63 = vpop.eup %2817  ;;  %v1901_v14 = vadd.f32 1.0, %v2816_v0  ;;  %v2607_v20 = vpack.c.bf16 %v1930_v28, %v1928_v13  ;;  %v1916_v58 = vmul.f32 0.5, %v1900_v62  ;;  %v1931_v26 = vmul.f32 %v1915_v33, %v1851_v16 }
 0x4a3   :  { %v2820_v19 = vpop.eup %2819  ;;  %v1854_v32 = vadd.f32 %v2818_v63, %v3667_v22  ;;  %v1938_v22 = vld [vmem:[%s3841_s9 + $0x18] sm:$0xff]  ;;  %v1974_v63 = vpop.permute.xlu0 %1973 }
 0x4a4   :  { %v1917_v18 = vmul.f32 0.5, %v1901_v14  ;;  %v1902_v25 = vadd.f32 1.0, %v2820_v19  ;;  %2608 = vmatprep.subr.bf16.mxu0 %v2607_v20  ;;  %v1932_v54 = vmul.f32 %v1916_v58, %v1852_v23 }
 0x4a5   :  { %2610 = vmatpush1.bf16.msra.mxu0 %v2609_v55 }
 0x4a6   :  { %v1933_v27 = vmul.f32 %v1917_v18, %v1853_v40  ;;  %v1918_v1 = vmul.f32 0.5, %v1902_v25 }
 0x4a8   :  { %v1934_v56 = vmul.f32 %v1918_v1, %v1854_v32  ;;  %v2613_v57 = vpack.c.bf16 %v1933_v27, %v1931_v26 }
 0x4aa   :  { %v2611_v9 = vpack.c.bf16 %v1934_v56, %v1932_v54 }
 0x4ac   :  { %2612 = vmatprep.subr.bf16.mxu0 %v2611_v9 }
 0x4ad   :  { %2614 = vmatpush1.bf16.msra.mxu0 %v2613_v57 }
 0x4b0   :  { %2554 = vmatmul.mubr.msk.f32.vlgmr.msra.gmra.mrb[20].mxu0 %vm1669_vm2, %v1935_v42 }
 0x4b1   :  { %2085 = vmatprep.mubr.f32.mxu0 %v2925_v2 }
 0x4b4   :  { %2555 = vmatmul.mubr.msk.f32.gmra.mrb[22].mxu0 %vm1669_vm2, %v1936_v50  ;;  %v1979_v50 = vpop.permute.xlu1 %1978 }
 0x4b5   :  { %2091 = vmatprep.mubr.f32.mxu0 %v2925_v2 }
 0x4b8   :  { %2556 = vmatmul.mubr.msk.f32.gmra.mrb[24].mxu0 %vm1669_vm2, %v1937_v53 }
 0x4b9   :  { %2097 = vmatprep.mubr.f32.mxu0 %v2925_v2 }
 0x4bc   :  { %2557 = vmatmul.mubr.msk.f32.gmra.mrb[26].mxu0 %vm1669_vm2, %v1938_v22 }
 0x4bd   :  { %2103 = vmatprep.mubr.f32.mxu0 %v2925_v2 }
 0x4c0   :  { %2558 = vmatmul.mubr.msk.f32.gmra.mrb[28].mxu0 %vm1669_vm2, %v1939_v6 }
 0x4c1   :  { %2109 = vmatprep.mubr.f32.mxu0 %v2925_v2 }
 0x4c4   :  { %2559 = vmatmul.mubr.msk.f32.gmra.mrb[30].mxu0 %vm1669_vm2, %v1940_v39 }
 0x4c5   :  { %2115 = vmatprep.mubr.f32.mxu0 %v2925_v2 }
 0x4c8   :  { %2560 = vmatmul.mubr.msk.f32.gmra.mrb[32].mxu0 %vm1669_vm2, %v1941_v24 }
 0x4c9   :  { %2121 = vmatprep.mubr.f32.mxu0 %v2925_v2 }
 0x4cc   :  { %2561 = vmatmul.mubr.msk.f32.gmra.mrb[34].mxu0 %vm1669_vm2, %v1942_v61 }
 0x4cd   :  { %2467 = vmatprep.mubr.f32.mxu0 %v2925_v2 }
 0x583   :  { %v2081_v44 = vpop.f32.mrb[20].mxu0 }
 0x584   :  { %v2082_v45 = vadd.f32 %v2081_v44, %v1954_v41  ;;  %v2083_v47 = vpop.f32.mrb[21].mxu0 }
 0x585   :  { %v2084_v10 = vadd.f32 %v2083_v47, %v1954_v41 }
 0x586   :  { %v2128_v4 = vmul.f32 30.0, %v2082_v45  ;;  %v2176_v48 = vmul.f32 0.5, %v2082_v45 }
 0x587   :  { %v2129_v49 = vmul.f32 30.0, %v2084_v10  ;;  %v2177_v17 = vmul.f32 0.5, %v2084_v10  ;;  %v2087_v37 = vpop.f32.mrb[22].mxu0 }
 0x588   :  { %2821 = vtanh.f32 %v2128_v4  ;;  %v3726_v35 = vadd.f32 %v2087_v37, %v1959_v7  ;;  %v2089_v30 = vpop.f32.mrb[23].mxu0 }
 0x589   :  { %2823 = vtanh.f32 %v2176_v48  ;;  %v3728_v51 = vadd.f32 %v2089_v30, %v1959_v7  ;;  %v1984_v30 = vpop.permute.xlu0 %1983 }
 0x58a   :  { %2825 = vtanh.f32 %v2129_v49  ;;  %v2130_v43 = vmul.f32 30.0, %v3726_v35  ;;  %v2178_v52 = vmul.f32 0.5, %v3726_v35 }
 0x58b   :  { %2827 = vtanh.f32 %v2177_v17  ;;  %v2131_v31 = vmul.f32 30.0, %v3728_v51  ;;  %v2179_v46 = vmul.f32 0.5, %v3728_v51  ;;  %v2093_v21 = vpop.f32.mrb[24].mxu0 }
 0x58c   :  { %2829 = vtanh.f32 %v2130_v43  ;;  %v3734_v5 = vadd.f32 %v2093_v21, %v1964_v8  ;;  %v2095_v15 = vpop.f32.mrb[25].mxu0 }
 0x58d   :  { %2831 = vtanh.f32 %v2178_v52  ;;  %v3736_v60 = vadd.f32 %v2095_v15, %v1964_v8 }
 0x58e   :  { %2833 = vtanh.f32 %v2131_v31  ;;  %v2132_v38 = vmul.f32 30.0, %v3734_v5  ;;  %v2180_v59 = vmul.f32 0.5, %v3734_v5 }
 0x58f   :  { %2835 = vtanh.f32 %v2179_v46  ;;  %v2133_v34 = vmul.f32 30.0, %v3736_v60  ;;  %v2181_v11 = vmul.f32 0.5, %v3736_v60  ;;  %v2099_v36 = vpop.f32.mrb[26].mxu0 }
 0x590   :  { %2837 = vtanh.f32 %v2132_v38  ;;  %v3742_v12 = vadd.f32 %v2099_v36, %v1969_v3  ;;  %v2101_v29 = vpop.f32.mrb[27].mxu0 }
 0x591   :  { %2839 = vtanh.f32 %v2180_v59  ;;  %v3744_v62 = vadd.f32 %v2101_v29, %v1969_v3 }
 0x592   :  { %v2822_v13 = vpop.eup %2821  ;;  %2841 = vtanh.f32 %v2133_v34  ;;  %v2134_v28 = vmul.f32 30.0, %v3742_v12  ;;  %v2182_v55 = vmul.f32 0.5, %v3742_v12 }
 0x593   :  { %v2824_v0 = vpop.eup %2823  ;;  %2843 = vtanh.f32 %v2181_v11  ;;  %v2183_v33 = vmul.f32 0.5, %v3744_v62  ;;  %v2105_v14 = vpop.f32.mrb[28].mxu0  ;;  %v2135_v16 = vmul.f32 30.0, %v3744_v62  ;;  %v2160_v26 = vadd.f32 %v2822_v13, %v2082_v45 }
 0x594   :  { %v2826_v20 = vpop.eup %2825  ;;  %v2208_v19 = vadd.f32 1.0, %v2824_v0  ;;  %2845 = vtanh.f32 %v2134_v28  ;;  %v3750_v40 = vadd.f32 %v2105_v14, %v1974_v63  ;;  %v2107_v18 = vpop.f32.mrb[29].mxu0 }
 0x595   :  { %v2828_v25 = vpop.eup %2827  ;;  %2847 = vtanh.f32 %v2182_v55  ;;  %v3752_v58 = vadd.f32 %v2107_v18, %v1974_v63  ;;  %v3755_v54 = vadd.f32 %v2826_v20, %v2084_v10  ;;  %v1989_v55 = vpop.permute.xlu1 %1988 }
 0x596   :  { %v2830_v23 = vpop.eup %2829  ;;  %v2224_v27 = vmul.f32 0.5, %v2208_v19  ;;  %v2136_v32 = vmul.f32 30.0, %v3750_v40  ;;  %v2209_v56 = vadd.f32 1.0, %v2828_v25  ;;  %2849 = vtanh.f32 %v2183_v33 }
 0x597   :  { %v2832_v1 = vpop.eup %2831  ;;  %v2184_v57 = vmul.f32 0.5, %v3750_v40  ;;  %v2111_v9 = vpop.f32.mrb[30].mxu0  ;;  %2851 = vtanh.f32 %v2135_v16  ;;  %v2137_v22 = vmul.f32 30.0, %v3752_v58  ;;  %v2185_v6 = vmul.f32 0.5, %v3752_v58 }
 0x598   :  { %v2834_v42 = vpop.eup %2833  ;;  %v2210_v53 = vadd.f32 1.0, %v2832_v1  ;;  %v2113_v39 = vpop.f32.mrb[31].mxu0  ;;  %v2162_v61 = vadd.f32 %v2830_v23, %v3726_v35  ;;  %v3761_v41 = vadd.f32 %v2111_v9, %v1979_v50  ;;  %v3765_v47 = vmul.f32 %v2224_v27, %v2160_v26 }
 0x599   :  { %v2836_v24 = vpop.eup %2835  ;;  %2853 = vtanh.f32 %v2184_v57  ;;  %v3763_v44 = vadd.f32 %v2113_v39, %v1979_v50  ;;  %v3768_v4 = vadd.f32 %v2834_v42, %v3728_v51  ;;  %v2225_v15 = vmul.f32 0.5, %v2209_v56 }
 0x59a   :  { %v2838_v45 = vpop.eup %2837  ;;  %v2226_v10 = vmul.f32 0.5, %v2210_v53  ;;  %2855 = vtanh.f32 %v2136_v32  ;;  %v2211_v7 = vadd.f32 1.0, %v2836_v24  ;;  %v2138_v49 = vmul.f32 30.0, %v3761_v41 }
 0x59b   :  { %v2840_v48 = vpop.eup %2839  ;;  %2857 = vtanh.f32 %v2185_v6  ;;  %v2186_v17 = vmul.f32 0.5, %v3761_v41  ;;  %v2117_v37 = vpop.f32.mrb[32].mxu0  ;;  %v2139_v52 = vmul.f32 30.0, %v3763_v44  ;;  %v2187_v8 = vmul.f32 0.5, %v3763_v44 }
 0x59c   :  { %v2842_v35 = vpop.eup %2841  ;;  %v2212_v43 = vadd.f32 1.0, %v2840_v48  ;;  %2859 = vtanh.f32 %v2137_v22  ;;  %v2119_v31 = vpop.f32.mrb[33].mxu0  ;;  %v3774_v46 = vadd.f32 %v2117_v37, %v1984_v30  ;;  %v3778_v59 = vmul.f32 %v2226_v10, %v2162_v61 }
 0x59d   :  { %v2844_v51 = vpop.eup %2843  ;;  %2861 = vtanh.f32 %v2138_v49  ;;  %v3776_v21 = vadd.f32 %v2119_v31, %v1984_v30  ;;  %v2164_v3 = vadd.f32 %v2838_v45, %v3734_v5  ;;  %v2165_v34 = vadd.f32 %v2842_v35, %v3736_v60 }
 0x59e   :  { %v2846_v38 = vpop.eup %2845  ;;  %2863 = vtanh.f32 %v2186_v17  ;;  %v2228_v36 = vmul.f32 0.5, %v2212_v43  ;;  %v2140_v29 = vmul.f32 30.0, %v3774_v46  ;;  %v2188_v13 = vmul.f32 0.5, %v3774_v46 }
 0x59f   :  { %v2848_v11 = vpop.eup %2847  ;;  %2865 = vtanh.f32 %v2139_v52  ;;  %v2123_v28 = vpop.f32.mrb[34].mxu0  ;;  %v2213_v0 = vadd.f32 1.0, %v2844_v51  ;;  %v2141_v33 = vmul.f32 30.0, %v3776_v21  ;;  %v2189_v5 = vmul.f32 0.5, %v3776_v21 }
 0x5a0   :  { %v2214_v63 = vadd.f32 1.0, %v2848_v11  ;;  %2867 = vtanh.f32 %v2187_v8  ;;  %v2125_v14 = vpop.f32.mrb[35].mxu0  ;;  %v2850_v20 = vpop.eup %2849  ;;  %v3786_v60 = vadd.f32 %v2123_v28, %v1989_v55  ;;  %v2227_v19 = vmul.f32 0.5, %v2211_v7 }
 0x5a1   :  { %2869 = vtanh.f32 %v2140_v29  ;;  %v2852_v16 = vpop.eup %2851  ;;  %v2166_v18 = vadd.f32 %v2846_v38, %v3742_v12  ;;  %v3789_v23 = vadd.f32 %v2125_v14, %v1989_v55  ;;  %v2215_v27 = vadd.f32 1.0, %v2850_v20 }
 0x5a2   :  { %v2230_v25 = vmul.f32 0.5, %v2214_v63  ;;  %2871 = vtanh.f32 %v2188_v13  ;;  %v2142_v32 = vmul.f32 30.0, %v3786_v60  ;;  %v2190_v1 = vmul.f32 0.5, %v3786_v60 }
 0x5a3   :  { %v2854_v26 = vpop.eup %2853  ;;  %2873 = vtanh.f32 %v2141_v33  ;;  %v2244_v57 = vmul.f32 %v2228_v36, %v2164_v3  ;;  %v2143_v42 = vmul.f32 30.0, %v3789_v23  ;;  %v2167_v12 = vadd.f32 %v2852_v16, %v3744_v62 }
 0x5a4   :  { %v2856_v56 = vpop.eup %2855  ;;  %v2216_v9 = vadd.f32 1.0, %v2854_v26  ;;  %2875 = vtanh.f32 %v2189_v5  ;;  %v2246_v53 = vmul.f32 %v2230_v25, %v2166_v18  ;;  %v2191_v22 = vmul.f32 0.5, %v3789_v23 }
 0x5a5   :  { %v2858_v50 = vpop.eup %2857  ;;  %2877 = vtanh.f32 %v2142_v32  ;;  %v2241_v24 = vmul.f32 %v2225_v15, %v3755_v54  ;;  %v2243_v61 = vmul.f32 %v2227_v19, %v3768_v4  ;;  %v2617_v10 = vpack.c.bf16 %v3778_v59, %v3765_v47 }
 0x5a6   :  { %v2860_v6 = vpop.eup %2859  ;;  %v2217_v39 = vadd.f32 1.0, %v2858_v50  ;;  %2879 = vtanh.f32 %v2190_v1  ;;  %v2229_v48 = vmul.f32 0.5, %v2213_v0  ;;  %v2231_v7 = vmul.f32 0.5, %v2215_v27 }
 0x5a7   :  { %v2862_v45 = vpop.eup %2861  ;;  %2881 = vtanh.f32 %v2143_v42  ;;  %v2232_v17 = vmul.f32 0.5, %v2216_v9  ;;  %v2615_v62 = vpack.c.bf16 %v2243_v61, %v2241_v24  ;;  %v2621_v52 = vpack.c.bf16 %v2246_v53, %v2244_v57 }
 0x5a8   :  { %v2864_v49 = vpop.eup %2863  ;;  %2883 = vtanh.f32 %v2191_v22  ;;  %v2245_v30 = vmul.f32 %v2229_v48, %v2165_v34  ;;  %v2247_v43 = vmul.f32 %v2231_v7, %v2167_v12  ;;  %v2168_v54 = vadd.f32 %v2856_v56, %v3750_v40 }
 0x5a9   :  { %v2866_v37 = vpop.eup %2865  ;;  %v2218_v35 = vadd.f32 1.0, %v2864_v49  ;;  %v2170_v4 = vadd.f32 %v2862_v45, %v3761_v41  ;;  %2616 = vmatprep.subr.bf16.mxu1 %v2615_v62  ;;  %v2233_v38 = vmul.f32 0.5, %v2217_v39  ;;  %v2169_v11 = vadd.f32 %v2860_v6, %v3752_v58  ;;  %v2268_v45 = vpop.permute.xlu1 %2267 }
 0x5aa   :  { %v2868_v8 = vpop.eup %2867  ;;  %2618 = vmatpush1.bf16.msra.mxu1 %v2617_v10  ;;  %v2619_v15 = vpack.c.bf16 %v2247_v43, %v2245_v30  ;;  %v2248_v3 = vmul.f32 %v2232_v17, %v2168_v54  ;;  %v2171_v29 = vadd.f32 %v2866_v37, %v3763_v44 }
 0x5ab   :  { %v2870_v31 = vpop.eup %2869  ;;  %v2234_v51 = vmul.f32 0.5, %v2218_v35  ;;  %v2219_v47 = vadd.f32 1.0, %v2868_v8  ;;  %v2249_v0 = vmul.f32 %v2233_v38, %v2169_v11 }
 0x5ac   :  { %v2872_v59 = vpop.eup %2871  ;;  %2620 = vmatprep.subr.bf16.mxu1 %v2619_v15  ;;  %v2172_v18 = vadd.f32 %v2870_v31, %v3774_v46  ;;  %v2256_v46 = vld [vmem:[%s3843_s11] sm:$0xff] }
 0x5ad   :  { %v2874_v36 = vpop.eup %2873  ;;  %v2250_v34 = vmul.f32 %v2234_v51, %v2170_v4  ;;  %v2220_v13 = vadd.f32 1.0, %v2872_v59  ;;  %v2235_v40 = vmul.f32 0.5, %v2219_v47 }
 0x5ae   :  { %v2876_v28 = vpop.eup %2875  ;;  %2622 = vmatpush1.bf16.msra.mxu1 %v2621_v52  ;;  %v2173_v32 = vadd.f32 %v2874_v36, %v3776_v21  ;;  %v2257_v21 = vld [vmem:[%s3843_s11 + $0x8] sm:$0xf] }
 0x5af   :  { %v2878_v41 = vpop.eup %2877  ;;  %v2221_v55 = vadd.f32 1.0, %v2876_v28  ;;  %v2251_v63 = vmul.f32 %v2235_v40, %v2171_v29  ;;  %v2625_v33 = vpack.c.bf16 %v2250_v34, %v2248_v3  ;;  %v2236_v5 = vmul.f32 0.5, %v2220_v13 }
 0x5b0   :  { %v2880_v14 = vpop.eup %2879  ;;  %v2174_v44 = vadd.f32 %v2878_v41, %v3786_v60  ;;  %v2263_v60 = vpop.permute.xlu0 %2262 }
 0x5b1   :  { %v2882_v20 = vpop.eup %2881  ;;  %v2222_v19 = vadd.f32 1.0, %v2880_v14  ;;  %v2623_v16 = vpack.c.bf16 %v2251_v63, %v2249_v0  ;;  %v2237_v27 = vmul.f32 0.5, %v2221_v55  ;;  %v2252_v1 = vmul.f32 %v2236_v5, %v2172_v18  ;;  %v2385_v5 = vld [vmem:[%s3845_s13] sm:$0x7] }
 0x5b2   :  { %v2884_v58 = vpop.eup %2883  ;;  %v2175_v57 = vadd.f32 %v2882_v20, %v3789_v23 }
 0x5b3   :  { %v2238_v25 = vmul.f32 0.5, %v2222_v19  ;;  %v2223_v26 = vadd.f32 1.0, %v2884_v58  ;;  %2624 = vmatprep.subr.bf16.mxu1 %v2623_v16  ;;  %v2253_v42 = vmul.f32 %v2237_v27, %v2173_v32 }
 0x5b4   :  { %2626 = vmatpush1.bf16.msra.mxu1 %v2625_v33  ;;  %v2390_v19 = vpop.permute.xlu0 %2389 }
 0x5b5   :  { %v2254_v56 = vmul.f32 %v2238_v25, %v2174_v44  ;;  %v2239_v9 = vmul.f32 0.5, %v2223_v26 }
 0x5b7   :  { %v2255_v50 = vmul.f32 %v2239_v9, %v2175_v57  ;;  %v2629_v53 = vpack.c.bf16 %v2254_v56, %v2252_v1 }
 0x5b9   :  { %v2627_v12 = vpack.c.bf16 %v2255_v50, %v2253_v42 }
 0x5bb   :  { %2628 = vmatprep.subr.bf16.mxu1 %v2627_v12 }
 0x5bc   :  { %2630 = vmatpush1.bf16.msra.mxu1 %v2629_v53 }
 0x5bf   :  { %2562 = vmatmul.mubr.msk.f32.vlgmr.msra.gmra.mrb[24].mxu1 %vm1669_vm2, %v2256_v46 }
 0x5c0   :  { %2346 = vmatprep.mubr.f32.mxu1 %v2925_v2 }
 0x5c3   :  { %2563 = vmatmul.mubr.msk.f32.gmra.mrb[26].mxu1 %vm1669_vm2, %v2257_v21 }
 0x692   :  { %v2342_v23 = vpop.f32.mrb[24].mxu1 }
 0x693   :  { %v2343_v22 = vadd.f32 %v2342_v23, %v2263_v60  ;;  %v2344_v6 = vpop.f32.mrb[25].mxu1 }
 0x694   :  { %v2345_v39 = vadd.f32 %v2344_v6, %v2263_v60 }
 0x695   :  { %v2353_v24 = vmul.f32 30.0, %v2343_v22  ;;  %v2365_v61 = vmul.f32 0.5, %v2343_v22 }
 0x696   :  { %v2354_v10 = vmul.f32 30.0, %v2345_v39  ;;  %v2366_v48 = vmul.f32 0.5, %v2345_v39  ;;  %v2348_v7 = vpop.f32.mrb[26].mxu1 }
 0x697   :  { %2885 = vtanh.f32 %v2353_v24  ;;  %v2349_v49 = vadd.f32 %v2348_v7, %v2268_v45  ;;  %v2350_v2 = vpop.f32.mrb[27].mxu1 }
 0x698   :  { %2887 = vtanh.f32 %v2365_v61  ;;  %v2351_v17 = vadd.f32 %v2350_v2, %v2268_v45 }
 0x699   :  { %2889 = vtanh.f32 %v2354_v10  ;;  %v2355_v62 = vmul.f32 30.0, %v2349_v49  ;;  %v2367_v37 = vmul.f32 0.5, %v2349_v49 }
 0x69a   :  { %2891 = vtanh.f32 %v2366_v48  ;;  %v2356_v35 = vmul.f32 30.0, %v2351_v17  ;;  %v2368_v30 = vmul.f32 0.5, %v2351_v17 }
 0x69b   :  { %2893 = vtanh.f32 %v2355_v62 }
 0x69c   :  { %2895 = vtanh.f32 %v2367_v37 }
 0x69d   :  { %2897 = vtanh.f32 %v2356_v35 }
 0x69e   :  { %2899 = vtanh.f32 %v2368_v30 }
 0x6a1   :  { %v2886_v43 = vpop.eup %2885 }
 0x6a2   :  { %v2888_v52 = vpop.eup %2887  ;;  %v2361_v11 = vadd.f32 %v2886_v43, %v2343_v22 }
 0x6a3   :  { %v2890_v8 = vpop.eup %2889  ;;  %v2373_v54 = vadd.f32 1.0, %v2888_v52 }
 0x6a4   :  { %v2892_v4 = vpop.eup %2891  ;;  %v2362_v40 = vadd.f32 %v2890_v8, %v2345_v39 }
 0x6a5   :  { %v2894_v31 = vpop.eup %2893  ;;  %v2374_v51 = vadd.f32 1.0, %v2892_v4  ;;  %v2377_v38 = vmul.f32 0.5, %v2373_v54 }
 0x6a6   :  { %v2896_v47 = vpop.eup %2895  ;;  %v2363_v34 = vadd.f32 %v2894_v31, %v2349_v49 }
 0x6a7   :  { %v2898_v15 = vpop.eup %2897  ;;  %v2375_v59 = vadd.f32 1.0, %v2896_v47  ;;  %v2378_v36 = vmul.f32 0.5, %v2374_v51  ;;  %v2381_v28 = vmul.f32 %v2377_v38, %v2361_v11 }
 0x6a8   :  { %v2900_v3 = vpop.eup %2899  ;;  %v2364_v55 = vadd.f32 %v2898_v15, %v2351_v17 }
 0x6a9   :  { %v2379_v29 = vmul.f32 0.5, %v2375_v59  ;;  %v2376_v13 = vadd.f32 1.0, %v2900_v3  ;;  %v2382_v63 = vmul.f32 %v2378_v36, %v2362_v40 }
 0x6ab   :  { %v2383_v41 = vmul.f32 %v2379_v29, %v2363_v34  ;;  %v2380_v0 = vmul.f32 0.5, %v2376_v13 }
 0x6ad   :  { %v2634_v33 = vpack.c.bf16 %v2383_v41, %v2381_v28  ;;  %v2384_v14 = vmul.f32 %v2380_v0, %v2364_v55 }
 0x6af   :  { %v2631_v20 = vpack.c.bf16 %v2384_v14, %v2382_v63 }
 0x6b1   :  { %2633 = vmatprep.subr.msk.bf16.mxu0 %vm2632_vm7, %v2631_v20 }
 0x6b2   :  { %2636 = vmatpush1.bf16.msk.msra.mxu0 %vm2632_vm7, %v2634_v33 }
 0x6b5   :  { %2566 = vmatmul.mubr.msk.f32.vlgmr.msra.gmra.mrb[36].mxu0 %vm2392_vm8, %v2385_v5 }
 0x788   :  { %v2469_v16 = vpop.f32.mrb[36].mxu0 }
 0x789   :  { %v2470_v58 = vadd.f32 %v2469_v16, %v2390_v19  ;;  %v2471_v18 = vpop.f32.mrb[37].mxu0 }
 0x78a   :  { %v2472_v44 = vadd.f32 %v2471_v18, %v2390_v19 }
 0x78c   :  { %v2476_v25 = vcombine.low %v2470_v58, %v2472_v44 }
 0x78e   :  { %2478 = vst [vmem:[#allocation2] sm:$0x77] %v2476_v25 }
 0x78f   :  { %2912 = shalt.err (!%p2909_p4)
}
 0x790   :  { %s2913_s0 = scalar_lea.hbm %s3847_s15, 128 }
 0x791   :  { %p2914_p5 = scmp.ne.s32.totalorder %s3847_s15, %s2913_s0  ;;  %p2917_p6 = scmp.lt.u32.totalorder %s2913_s0, %s3847_s15 }
 0x793   :  { %p2919_p7 = pnand %p2917_p6, %p2914_p5 }
 0x795   :  { %2922 = shalt.err (!%p2919_p7)
}
 0x796   :  { %2488 = dma.vmem_to_hbm [thread:$0]  %s2486_s2, 128, %s3847_s15, [#allocation3]  }
 0x797   :  { %2923 = dma.done.wait [#allocation3], 128  }
 0x798   :  { %2924 = vsyncadd [#allocation3], 4294967168 }
 0x799   :  { %2492 = vsyncpa [#allocation3], 1 }

</bundles_post_ra>
